<compile_context>
chip_gen: v5e
topology: v5e:2x2
jax: 0.10.0
libtpu: 0.0.40
codegen_flags: <defaults>
</compile_context>

<pallas_src>
import functools

import jax
import jax.numpy as jnp
import numpy as np
from jax.experimental import pallas as pl
from jax.experimental.pallas import tpu as pltpu

EPS = 1e-5


# --------------------------- fused bottleneck kernel ------------------------

def _bottleneck_kernel(*refs, kt, pad_t, t_in, nb, h, w, fuse_spatial):
    """One grid step = one output frame for `nb` batch samples.

    refs = (x_tap_0 .. x_tap_{kt-1}, w1, b1, w2, b2, w3, b3, out, y1p_scratch)

    x_tap_dt : (NB, H, W, Cin)     bf16  frame (t + dt - pad_t), clamped
    w1       : (kt, Cin, C1)       bf16  BN1 scale folded in
    w2       : (9, C1, C2)         bf16  BN2 scale folded in
    w3       : (C2, C3)            bf16  BN3 scale folded in
    b1/b2/b3 : (1, C*)             f32
    out      : (NB, H, W, C3)      f32
    y1p      : (NB, H+2, Wpad, C1) bf16  VMEM halo scratch, interior at col 8
    """
    x_taps = refs[:kt]
    w1_ref, b1_ref, w2_ref, b2_ref, w3_ref, b3_ref = refs[kt:kt + 6]
    o_ref = refs[kt + 6]
    y1p = refs[kt + 7]

    cin = x_taps[0].shape[-1]
    c1 = w1_ref.shape[-1]
    c2 = w2_ref.shape[-1]
    c3 = w3_ref.shape[-1]
    rows = nb * h * w
    t = pl.program_id(0)

    # ---- conv1 (kt x 1 x 1) + BN1 + ReLU; f32 accumulation on the MXU ------
    # Input is NOT temporally padded in HBM: the tap index_map clamps the
    # frame index and the out-of-range contribution is zeroed here.
    x_c = x_taps[pad_t][...].reshape(rows, cin)        # centre tap == frame t
    acc1 = jnp.dot(x_c, w1_ref[pad_t], preferred_element_type=jnp.float32)
    for dt in range(kt):
        if dt == pad_t:
            continue
        tsrc = t + (dt - pad_t)
        valid = jnp.logical_and(tsrc >= 0, tsrc < t_in).astype(jnp.float32)
        tap = x_taps[dt][...].reshape(rows, cin)
        acc1 = acc1 + valid * jnp.dot(tap, w1_ref[dt],
                                      preferred_element_type=jnp.float32)
    # TODO(synk): for Cin % 128 == 0 the kt taps could be concatenated into a
    # single K = kt*Cin MXU dot (v6e issue/drain win); kept as kt dots here.
    y1 = jnp.maximum(acc1 + b1_ref[...], 0.0).astype(jnp.bfloat16)

    # ---- spatial halo entirely in VMEM (y1 never goes to HBM) --------------
    # Interior starts at column 8 so the store below is sublane-aligned; the
    # (always-zero) border is re-established by a cheap whole-scratch memset.
    y1p[...] = jnp.zeros_like(y1p)
    y1p[:, 1:h + 1, 8:8 + w, :] = y1.reshape(nb, h, w, c1)

    # ---- conv2 (1 x 3 x 3) + BN2 + ReLU -------------------------------------
    taps = [y1p[:, dh:dh + h, 7 + dw:7 + dw + w, :].reshape(rows, c1)
            for dh in range(3) for dw in range(3)]
    if fuse_spatial:
        # Production path (C1 % 128 == 0): lane-aligned im2col concat and ONE
        # MXU dot with K = 9*C1.
        im2col = jnp.concatenate(taps, axis=-1)                 # (rows, 9*C1)
        acc2 = jnp.dot(im2col, w2_ref[...].reshape(9 * c1, c2),
                       preferred_element_type=jnp.float32)
    else:
        # Small-C1 path: an unaligned minor-dim concat may not lower, so the
        # nine taps are accumulated as separate MXU dots (proven lowering).
        acc2 = None
        for i in range(9):
            part = jnp.dot(taps[i], w2_ref[i],
                           preferred_element_type=jnp.float32)
            acc2 = part if acc2 is None else acc2 + part
    y2 = jnp.maximum(acc2 + b2_ref[...], 0.0).astype(jnp.bfloat16)

    # ---- conv3 (1 x 1 x 1) + BN3 + identity residual + ReLU ----------------
    acc3 = jnp.dot(y2, w3_ref[...], preferred_element_type=jnp.float32)
    res = x_c.astype(jnp.float32)          # identity residual (Cin == C3)
    y3 = jnp.maximum(acc3 + b3_ref[...] + res, 0.0)
    o_ref[...] = y3.reshape(nb, h, w, c3).astype(o_ref.dtype)


# ------------------------------ Bottleneck ----------------------------------

def bottleneck_forward(x_ncthw, p):
    """Pallas-backed forward. x_ncthw: (N, C, T, H, W) float32."""
    w1, w2, w3 = p["w1"], p["w2"], p["w3"]
    c1, cin, kt, _, _ = w1.shape
    c2 = w2.shape[0]
    c3 = w3.shape[0]
    stride, ts = p["stride"], p["temp_stride"]
    n, _, t, h, w = x_ncthw.shape
    pad_t = (kt - 1) // 2
    t_out = (t + 2 * pad_t - kt) // ts + 1

    # downsample=None => identity residual; only valid for this configuration.
    assert stride == 1 and ts == 1 and cin == c3 and t_out == t, (
        "identity residual (downsample=None) requires stride==1, "
        "temp_stride==1 and inplanes == 4*planes")

    # channels-last, time-major layout; bf16 operands for the big tensors.
    xt = jnp.transpose(x_ncthw, (2, 0, 3, 4, 1)).astype(jnp.bfloat16)  # (T,N,H,W,C)

    # Fold the BN scales into the weight columns (host-side precompute).
    w1m = (jnp.transpose(w1[:, :, :, 0, 0], (2, 1, 0))          # (kt, Cin, C1)
           * p["bn1_scale"]).astype(jnp.bfloat16)
    b1 = p["bn1_bias"].reshape(1, c1).astype(jnp.float32)
    w2m = (jnp.transpose(w2[:, :, 0, :, :], (2, 3, 1, 0))       # (3,3,C1,C2)
           .reshape(9, c1, c2) * p["bn2_scale"]).astype(jnp.bfloat16)
    b2 = p["bn2_bias"].reshape(1, c2).astype(jnp.float32)
    w3m = (jnp.transpose(w3[:, :, 0, 0, 0], (1, 0))             # (C2, C3)
           * p["bn3_scale"]).astype(jnp.bfloat16)
    b3 = p["bn3_bias"].reshape(1, c3).astype(jnp.float32)

    nb = 1                                   # batch samples per grid step
    w_pad = ((w + 9 + 7) // 8) * 8           # haloed scratch width (col 8.. = interior)
    grid = (t_out, n // nb)                  # >= 2*t_out parallel steps (megacore)

    def tap_spec(dt):
        shift = dt - pad_t

        def imap(ti, bi):
            return (jnp.clip(ti + shift, 0, t - 1), bi, 0, 0, 0)

        return pl.BlockSpec((None, nb, h, w, cin), imap)

    in_specs = [tap_spec(dt) for dt in range(kt)]
    in_specs += [
        pl.BlockSpec((kt, cin, c1), lambda ti, bi: (0, 0, 0)),
        pl.BlockSpec((1, c1), lambda ti, bi: (0, 0)),
        pl.BlockSpec((9, c1, c2), lambda ti, bi: (0, 0, 0)),
        pl.BlockSpec((1, c2), lambda ti, bi: (0, 0)),
        pl.BlockSpec((c2, c3), lambda ti, bi: (0, 0)),
        pl.BlockSpec((1, c3), lambda ti, bi: (0, 0)),
    ]
    out_spec = pl.BlockSpec((None, nb, h, w, c3),
                            lambda ti, bi: (ti, bi, 0, 0, 0))

    kernel = functools.partial(
        _bottleneck_kernel, kt=kt, pad_t=pad_t, t_in=t, nb=nb, h=h, w=w,
        fuse_spatial=(c1 % 128 == 0))

    out = pl.pallas_call(
        kernel,
        out_shape=jax.ShapeDtypeStruct((t_out, n, h, w, c3), jnp.float32),
        grid_spec=pltpu.PrefetchScalarGridSpec(
            num_scalar_prefetch=0, grid=grid,
            in_specs=in_specs, out_specs=out_spec,
            scratch_shapes=[pltpu.VMEM((nb, h + 2, w_pad, c1), jnp.bfloat16)]),
        compiler_params=pltpu.CompilerParams(
            dimension_semantics=("parallel", "parallel"),
            vmem_limit_bytes=48 * 1024 * 1024),
    )(*([xt] * kt), w1m, b1, w2m, b2, w3m, b3)

    return jnp.transpose(out, (1, 4, 0, 2, 3))       # back to (N, C, T, H, W)


# --------------------------- pure-JAX reference -----------------------------

def reference_forward(x_ncthw, p):
    x = jnp.transpose(x_ncthw, (0, 2, 3, 4, 1))

    def conv(y, w_torch, strides, padding):
        wj = jnp.transpose(w_torch, (2, 3, 4, 1, 0))  # -> DHWIO
        return jax.lax.conv_general_dilated(
            y, wj, window_strides=strides, padding=padding,
            dimension_numbers=("NDHWC", "DHWIO", "NDHWC"))

    kt = p["w1"].shape[2]
    pad_t = (kt - 1) // 2
    y = conv(x, p["w1"], (p["temp_stride"], 1, 1),
             [(pad_t, pad_t), (0, 0), (0, 0)])
    y = jnp.maximum(y * p["bn1_scale"] + p["bn1_bias"], 0.0)
    y = conv(y, p["w2"], (1, p["stride"], p["stride"]),
             [(0, 0), (1, 1), (1, 1)])
    y = jnp.maximum(y * p["bn2_scale"] + p["bn2_bias"], 0.0)
    y = conv(y, p["w3"], (1, 1, 1), [(0, 0), (0, 0), (0, 0)])
    y = y * p["bn3_scale"] + p["bn3_bias"]
    y = jnp.maximum(y + x, 0.0)
    return jnp.transpose(y, (0, 4, 1, 2, 3))


# ------------------------------- main ---------------------------------------

def make_params(key, inplanes, planes, stride, temp_conv, temp_stride):
    kt = 1 + 2 * temp_conv
    ks = jax.random.split(key, 16)
    i = iter(range(16))

    def bn_params(kg, kb, km, kv, c):
        gamma = jax.random.uniform(kg, (c,), minval=0.5, maxval=1.5)
        beta = 0.1 * jax.random.normal(kb, (c,))
        mean = 0.1 * jax.random.normal(km, (c,))
        var = jax.random.uniform(kv, (c,), minval=0.5, maxval=1.5)
        scale = gamma / jnp.sqrt(var + EPS)
        bias = beta - mean * scale
        return scale.astype(jnp.float32), bias.astype(jnp.float32)

    w1 = 0.1 * jax.random.normal(ks[next(i)], (planes, inplanes, kt, 1, 1))
    w2 = 0.1 * jax.random.normal(ks[next(i)], (planes, planes, 1, 3, 3))
    w3 = 0.1 * jax.random.normal(ks[next(i)], (planes * 4, planes, 1, 1, 1))
    bn1_s, bn1_b = bn_params(ks[next(i)], ks[next(i)], ks[next(i)], ks[next(i)], planes)
    bn2_s, bn2_b = bn_params(ks[next(i)], ks[next(i)], ks[next(i)], ks[next(i)], planes)
    bn3_s, bn3_b = bn_params(ks[next(i)], ks[next(i)], ks[next(i)], ks[next(i)], planes * 4)
    return dict(w1=w1.astype(jnp.float32), w2=w2.astype(jnp.float32),
                w3=w3.astype(jnp.float32),
                bn1_scale=bn1_s, bn1_bias=bn1_b,
                bn2_scale=bn2_s, bn2_bias=bn2_b,
                bn3_scale=bn3_s, bn3_bias=bn3_b,
                stride=stride, temp_stride=temp_stride)


if __name__ == "__main__":
    # Bottleneck(inplanes=32, planes=8, stride=1, downsample=None,
    #            temp_conv=1, temp_stride=1)  -> output channels = 8*4 = 32
    inplanes, planes = 32, 8
    stride, temp_conv, temp_stride = 1, 1, 1
    N, T, H, W = 2, 4, 8, 8

    key = jax.random.PRNGKey(0)
    kx, kp = jax.random.split(key)
    x = jax.random.normal(kx, (N, inplanes, T, H, W), dtype=jnp.float32)
    params = make_params(kp, inplanes, planes, stride, temp_conv, temp_stride)

    out = bottleneck_forward(x, params)
    out = jax.block_until_ready(out)

    ref = jax.block_until_ready(reference_forward(x, params))
    # bf16 operands on the MXU path -> loosened tolerance vs the f32 reference.
    np.testing.assert_allclose(np.asarray(out), np.asarray(ref),
                               rtol=5e-2, atol=5e-2)
    assert out.shape == (N, planes * 4, T, H, W)
    print("KERNEL_OK")
</pallas_src>

<mosaic_0001>
module attributes {stable_mosaic.version = 11 : i64} {
  func.func @_bottleneck_kernel(%arg0: i32, %arg1: i32, %arg2: memref<1x1x8x8x32xbf16, #tpu.memory_space<vmem>>, %arg3: memref<1x1x8x8x32xbf16, #tpu.memory_space<vmem>>, %arg4: memref<1x1x8x8x32xbf16, #tpu.memory_space<vmem>>, %arg5: memref<3x32x8xbf16, #tpu.memory_space<vmem>>, %arg6: memref<1x8xf32, #tpu.memory_space<vmem>>, %arg7: memref<9x8x8xbf16, #tpu.memory_space<vmem>>, %arg8: memref<1x8xf32, #tpu.memory_space<vmem>>, %arg9: memref<8x32xbf16, #tpu.memory_space<vmem>>, %arg10: memref<1x32xf32, #tpu.memory_space<vmem>>, %arg11: memref<1x1x8x8x32xf32, #tpu.memory_space<vmem>>, %arg12: memref<1x10x24x8xbf16, #tpu.memory_space<vmem>>) attributes {dimension_semantics = [#tpu.dimension_semantics<parallel>, #tpu.dimension_semantics<parallel>], iteration_bounds = array<i64: 4, 2>, scalar_prefetch = 0 : i64, scratch_operands = 1 : i64, tpu.core_type = #tpu.core_type<tc>, window_params = [{transform_indices = @transform_0, window_bounds = array<i64: 1, 1, 8, 8, 32>}, {transform_indices = @transform_1, window_bounds = array<i64: 1, 1, 8, 8, 32>}, {transform_indices = @transform_2, window_bounds = array<i64: 1, 1, 8, 8, 32>}, {pipeline_mode = #tpu.pipeline_mode<synchronous>, transform_indices = @transform_3, window_bounds = array<i64: 3, 32, 8>}, {pipeline_mode = #tpu.pipeline_mode<synchronous>, transform_indices = @transform_4, window_bounds = array<i64: 1, 8>}, {pipeline_mode = #tpu.pipeline_mode<synchronous>, transform_indices = @transform_5, window_bounds = array<i64: 9, 8, 8>}, {pipeline_mode = #tpu.pipeline_mode<synchronous>, transform_indices = @transform_6, window_bounds = array<i64: 1, 8>}, {pipeline_mode = #tpu.pipeline_mode<synchronous>, transform_indices = @transform_7, window_bounds = array<i64: 8, 32>}, {pipeline_mode = #tpu.pipeline_mode<synchronous>, transform_indices = @transform_8, window_bounds = array<i64: 1, 32>}, {transform_indices = @transform_9, window_bounds = array<i64: 1, 1, 8, 8, 32>}]} {
    %c0 = arith.constant 0 : index
    %c0_0 = arith.constant 0 : index
    %c0_1 = arith.constant 0 : index
    %c0_2 = arith.constant 0 : index
    %c0_3 = arith.constant 0 : index
    %0 = vector.load %arg3[%c0, %c0_0, %c0_1, %c0_2, %c0_3] : memref<1x1x8x8x32xbf16, #tpu.memory_space<vmem>>, vector<1x1x8x8x32xbf16>
    %1 = vector.shape_cast %0 : vector<1x1x8x8x32xbf16> to vector<1x8x8x32xbf16>
    %2 = vector.shape_cast %1 : vector<1x8x8x32xbf16> to vector<64x32xbf16>
    %c1 = arith.constant 1 : index
    %c0_4 = arith.constant 0 : index
    %c0_5 = arith.constant 0 : index
    %3 = vector.load %arg5[%c1, %c0_4, %c0_5] : memref<3x32x8xbf16, #tpu.memory_space<vmem>>, vector<1x32x8xbf16>
    %4 = vector.shape_cast %3 : vector<1x32x8xbf16> to vector<32x8xbf16>
    %cst = arith.constant dense<0.000000e+00> : vector<64x8xf32>
    %5 = tpu.matmul %2, %4, %cst {dimension_numbers = #tpu.dot_dimension_numbers<[1], [0], [0], [1], [0, 0, 1, 1], [], []>} : vector<64x32xbf16>, vector<32x8xbf16>, vector<64x8xf32> -> vector<64x8xf32>
    %c-1_i32 = arith.constant -1 : i32
    %6 = arith.addi %arg0, %c-1_i32 : i32
    %c0_i32 = arith.constant 0 : i32
    %7 = arith.cmpi sge, %6, %c0_i32 : i32
    %c4_i32 = arith.constant 4 : i32
    %8 = arith.cmpi slt, %6, %c4_i32 : i32
    %9 = arith.andi %7, %8 : i1
    %10 = arith.extui %9 : i1 to i32
    %11 = arith.sitofp %10 : i32 to f32
    %c0_6 = arith.constant 0 : index
    %c0_7 = arith.constant 0 : index
    %c0_8 = arith.constant 0 : index
    %c0_9 = arith.constant 0 : index
    %c0_10 = arith.constant 0 : index
    %12 = vector.load %arg2[%c0_6, %c0_7, %c0_8, %c0_9, %c0_10] : memref<1x1x8x8x32xbf16, #tpu.memory_space<vmem>>, vector<1x1x8x8x32xbf16>
    %13 = vector.shape_cast %12 : vector<1x1x8x8x32xbf16> to vector<1x8x8x32xbf16>
    %14 = vector.shape_cast %13 : vector<1x8x8x32xbf16> to vector<64x32xbf16>
    %c0_11 = arith.constant 0 : index
    %c0_12 = arith.constant 0 : index
    %c0_13 = arith.constant 0 : index
    %15 = vector.load %arg5[%c0_11, %c0_12, %c0_13] : memref<3x32x8xbf16, #tpu.memory_space<vmem>>, vector<1x32x8xbf16>
    %16 = vector.shape_cast %15 : vector<1x32x8xbf16> to vector<32x8xbf16>
    %cst_14 = arith.constant dense<0.000000e+00> : vector<64x8xf32>
    %17 = tpu.matmul %14, %16, %cst_14 {dimension_numbers = #tpu.dot_dimension_numbers<[1], [0], [0], [1], [0, 0, 1, 1], [], []>} : vector<64x32xbf16>, vector<32x8xbf16>, vector<64x8xf32> -> vector<64x8xf32>
    %18 = vector.broadcast %11 : f32 to vector<64x8xf32>
    %19 = arith.mulf %18, %17 : vector<64x8xf32>
    %20 = arith.addf %5, %19 : vector<64x8xf32>
    %c1_i32 = arith.constant 1 : i32
    %21 = arith.addi %arg0, %c1_i32 : i32
    %c0_i32_15 = arith.constant 0 : i32
    %22 = arith.cmpi sge, %21, %c0_i32_15 : i32
    %c4_i32_16 = arith.constant 4 : i32
    %23 = arith.cmpi slt, %21, %c4_i32_16 : i32
    %24 = arith.andi %22, %23 : i1
    %25 = arith.extui %24 : i1 to i32
    %26 = arith.sitofp %25 : i32 to f32
    %c0_17 = arith.constant 0 : index
    %c0_18 = arith.constant 0 : index
    %c0_19 = arith.constant 0 : index
    %c0_20 = arith.constant 0 : index
    %c0_21 = arith.constant 0 : index
    %27 = vector.load %arg4[%c0_17, %c0_18, %c0_19, %c0_20, %c0_21] : memref<1x1x8x8x32xbf16, #tpu.memory_space<vmem>>, vector<1x1x8x8x32xbf16>
    %28 = vector.shape_cast %27 : vector<1x1x8x8x32xbf16> to vector<1x8x8x32xbf16>
    %29 = vector.shape_cast %28 : vector<1x8x8x32xbf16> to vector<64x32xbf16>
    %c2 = arith.constant 2 : index
    %c0_22 = arith.constant 0 : index
    %c0_23 = arith.constant 0 : index
    %30 = vector.load %arg5[%c2, %c0_22, %c0_23] : memref<3x32x8xbf16, #tpu.memory_space<vmem>>, vector<1x32x8xbf16>
    %31 = vector.shape_cast %30 : vector<1x32x8xbf16> to vector<32x8xbf16>
    %cst_24 = arith.constant dense<0.000000e+00> : vector<64x8xf32>
    %32 = tpu.matmul %29, %31, %cst_24 {dimension_numbers = #tpu.dot_dimension_numbers<[1], [0], [0], [1], [0, 0, 1, 1], [], []>} : vector<64x32xbf16>, vector<32x8xbf16>, vector<64x8xf32> -> vector<64x8xf32>
    %33 = vector.broadcast %26 : f32 to vector<64x8xf32>
    %34 = arith.mulf %33, %32 : vector<64x8xf32>
    %35 = arith.addf %20, %34 : vector<64x8xf32>
    %c0_25 = arith.constant 0 : index
    %c0_26 = arith.constant 0 : index
    %36 = vector.load %arg6[%c0_25, %c0_26] : memref<1x8xf32, #tpu.memory_space<vmem>>, vector<1x8xf32>
    %37 = vector.broadcast %36 : vector<1x8xf32> to vector<64x8xf32>
    %38 = arith.addf %35, %37 : vector<64x8xf32>
    %cst_27 = arith.constant 0.000000e+00 : f32
    %39 = vector.broadcast %cst_27 : f32 to vector<64x8xf32>
    %40 = arith.maximumf %38, %39 : vector<64x8xf32>
    %41 = arith.truncf %40 : vector<64x8xf32> to vector<64x8xbf16>
    %cst_28 = arith.constant 0.000000e+00 : bf16
    %42 = vector.broadcast %cst_28 : bf16 to vector<1x10x24x8xbf16>
    %c0_29 = arith.constant 0 : index
    %c0_30 = arith.constant 0 : index
    %c0_31 = arith.constant 0 : index
    %c0_32 = arith.constant 0 : index
    %43 = vector.load %arg12[%c0_29, %c0_30, %c0_31, %c0_32] : memref<1x10x24x8xbf16, #tpu.memory_space<vmem>>, vector<1x10x24x8xbf16>
    tpu.vector_store %arg12[%c0_29, %c0_30, %c0_31, %c0_32], %42 {strides = array<i32>} : memref<1x10x24x8xbf16, #tpu.memory_space<vmem>>, vector<1x10x24x8xbf16>,
    %44 = vector.shape_cast %41 : vector<64x8xbf16> to vector<1x8x8x8xbf16>
    %c0_33 = arith.constant 0 : index
    %c1_34 = arith.constant 1 : index
    %c8 = arith.constant 8 : index
    %c0_35 = arith.constant 0 : index
    %45 = vector.load %arg12[%c0_33, %c1_34, %c8, %c0_35] : memref<1x10x24x8xbf16, #tpu.memory_space<vmem>>, vector<1x8x8x8xbf16>
    tpu.vector_store %arg12[%c0_33, %c1_34, %c8, %c0_35], %44 {strides = array<i32>} : memref<1x10x24x8xbf16, #tpu.memory_space<vmem>>, vector<1x8x8x8xbf16>,
    %c0_36 = arith.constant 0 : index
    %c0_37 = arith.constant 0 : index
    %c7 = arith.constant 7 : index
    %c0_38 = arith.constant 0 : index
    %46 = vector.load %arg12[%c0_36, %c0_37, %c7, %c0_38] : memref<1x10x24x8xbf16, #tpu.memory_space<vmem>>, vector<1x8x8x8xbf16>
    %47 = vector.shape_cast %46 : vector<1x8x8x8xbf16> to vector<64x8xbf16>
    %c0_39 = arith.constant 0 : index
    %c0_40 = arith.constant 0 : index
    %c8_41 = arith.constant 8 : index
    %c0_42 = arith.constant 0 : index
    %48 = vector.load %arg12[%c0_39, %c0_40, %c8_41, %c0_42] : memref<1x10x24x8xbf16, #tpu.memory_space<vmem>>, vector<1x8x8x8xbf16>
    %49 = vector.shape_cast %48 : vector<1x8x8x8xbf16> to vector<64x8xbf16>
    %c0_43 = arith.constant 0 : index
    %c0_44 = arith.constant 0 : index
    %c9 = arith.constant 9 : index
    %c0_45 = arith.constant 0 : index
    %50 = vector.load %arg12[%c0_43, %c0_44, %c9, %c0_45] : memref<1x10x24x8xbf16, #tpu.memory_space<vmem>>, vector<1x8x8x8xbf16>
    %51 = vector.shape_cast %50 : vector<1x8x8x8xbf16> to vector<64x8xbf16>
    %c0_46 = arith.constant 0 : index
    %c1_47 = arith.constant 1 : index
    %c7_48 = arith.constant 7 : index
    %c0_49 = arith.constant 0 : index
    %52 = vector.load %arg12[%c0_46, %c1_47, %c7_48, %c0_49] : memref<1x10x24x8xbf16, #tpu.memory_space<vmem>>, vector<1x8x8x8xbf16>
    %53 = vector.shape_cast %52 : vector<1x8x8x8xbf16> to vector<64x8xbf16>
    %c0_50 = arith.constant 0 : index
    %c1_51 = arith.constant 1 : index
    %c8_52 = arith.constant 8 : index
    %c0_53 = arith.constant 0 : index
    %54 = vector.load %arg12[%c0_50, %c1_51, %c8_52, %c0_53] : memref<1x10x24x8xbf16, #tpu.memory_space<vmem>>, vector<1x8x8x8xbf16>
    %55 = vector.shape_cast %54 : vector<1x8x8x8xbf16> to vector<64x8xbf16>
    %c0_54 = arith.constant 0 : index
    %c1_55 = arith.constant 1 : index
    %c9_56 = arith.constant 9 : index
    %c0_57 = arith.constant 0 : index
    %56 = vector.load %arg12[%c0_54, %c1_55, %c9_56, %c0_57] : memref<1x10x24x8xbf16, #tpu.memory_space<vmem>>, vector<1x8x8x8xbf16>
    %57 = vector.shape_cast %56 : vector<1x8x8x8xbf16> to vector<64x8xbf16>
    %c0_58 = arith.constant 0 : index
    %c2_59 = arith.constant 2 : index
    %c7_60 = arith.constant 7 : index
    %c0_61 = arith.constant 0 : index
    %58 = vector.load %arg12[%c0_58, %c2_59, %c7_60, %c0_61] : memref<1x10x24x8xbf16, #tpu.memory_space<vmem>>, vector<1x8x8x8xbf16>
    %59 = vector.shape_cast %58 : vector<1x8x8x8xbf16> to vector<64x8xbf16>
    %c0_62 = arith.constant 0 : index
    %c2_63 = arith.constant 2 : index
    %c8_64 = arith.constant 8 : index
    %c0_65 = arith.constant 0 : index
    %60 = vector.load %arg12[%c0_62, %c2_63, %c8_64, %c0_65] : memref<1x10x24x8xbf16, #tpu.memory_space<vmem>>, vector<1x8x8x8xbf16>
    %61 = vector.shape_cast %60 : vector<1x8x8x8xbf16> to vector<64x8xbf16>
    %c0_66 = arith.constant 0 : index
    %c2_67 = arith.constant 2 : index
    %c9_68 = arith.constant 9 : index
    %c0_69 = arith.constant 0 : index
    %62 = vector.load %arg12[%c0_66, %c2_67, %c9_68, %c0_69] : memref<1x10x24x8xbf16, #tpu.memory_space<vmem>>, vector<1x8x8x8xbf16>
    %63 = vector.shape_cast %62 : vector<1x8x8x8xbf16> to vector<64x8xbf16>
    %c0_70 = arith.constant 0 : index
    %c0_71 = arith.constant 0 : index
    %c0_72 = arith.constant 0 : index
    %64 = vector.load %arg7[%c0_70, %c0_71, %c0_72] : memref<9x8x8xbf16, #tpu.memory_space<vmem>>, vector<1x8x8xbf16>
    %65 = vector.shape_cast %64 : vector<1x8x8xbf16> to vector<8x8xbf16>
    %cst_73 = arith.constant dense<0.000000e+00> : vector<64x8xf32>
    %66 = tpu.matmul %47, %65, %cst_73 {dimension_numbers = #tpu.dot_dimension_numbers<[1], [0], [0], [1], [0, 0, 1, 1], [], []>} : vector<64x8xbf16>, vector<8x8xbf16>, vector<64x8xf32> -> vector<64x8xf32>
    %c1_74 = arith.constant 1 : index
    %c0_75 = arith.constant 0 : index
    %c0_76 = arith.constant 0 : index
    %67 = vector.load %arg7[%c1_74, %c0_75, %c0_76] : memref<9x8x8xbf16, #tpu.memory_space<vmem>>, vector<1x8x8xbf16>
    %68 = vector.shape_cast %67 : vector<1x8x8xbf16> to vector<8x8xbf16>
    %cst_77 = arith.constant dense<0.000000e+00> : vector<64x8xf32>
    %69 = tpu.matmul %49, %68, %cst_77 {dimension_numbers = #tpu.dot_dimension_numbers<[1], [0], [0], [1], [0, 0, 1, 1], [], []>} : vector<64x8xbf16>, vector<8x8xbf16>, vector<64x8xf32> -> vector<64x8xf32>
    %70 = arith.addf %66, %69 : vector<64x8xf32>
    %c2_78 = arith.constant 2 : index
    %c0_79 = arith.constant 0 : index
    %c0_80 = arith.constant 0 : index
    %71 = vector.load %arg7[%c2_78, %c0_79, %c0_80] : memref<9x8x8xbf16, #tpu.memory_space<vmem>>, vector<1x8x8xbf16>
    %72 = vector.shape_cast %71 : vector<1x8x8xbf16> to vector<8x8xbf16>
    %cst_81 = arith.constant dense<0.000000e+00> : vector<64x8xf32>
    %73 = tpu.matmul %51, %72, %cst_81 {dimension_numbers = #tpu.dot_dimension_numbers<[1], [0], [0], [1], [0, 0, 1, 1], [], []>} : vector<64x8xbf16>, vector<8x8xbf16>, vector<64x8xf32> -> vector<64x8xf32>
    %74 = arith.addf %70, %73 : vector<64x8xf32>
    %c3 = arith.constant 3 : index
    %c0_82 = arith.constant 0 : index
    %c0_83 = arith.constant 0 : index
    %75 = vector.load %arg7[%c3, %c0_82, %c0_83] : memref<9x8x8xbf16, #tpu.memory_space<vmem>>, vector<1x8x8xbf16>
    %76 = vector.shape_cast %75 : vector<1x8x8xbf16> to vector<8x8xbf16>
    %cst_84 = arith.constant dense<0.000000e+00> : vector<64x8xf32>
    %77 = tpu.matmul %53, %76, %cst_84 {dimension_numbers = #tpu.dot_dimension_numbers<[1], [0], [0], [1], [0, 0, 1, 1], [], []>} : vector<64x8xbf16>, vector<8x8xbf16>, vector<64x8xf32> -> vector<64x8xf32>
    %78 = arith.addf %74, %77 : vector<64x8xf32>
    %c4 = arith.constant 4 : index
    %c0_85 = arith.constant 0 : index
    %c0_86 = arith.constant 0 : index
    %79 = vector.load %arg7[%c4, %c0_85, %c0_86] : memref<9x8x8xbf16, #tpu.memory_space<vmem>>, vector<1x8x8xbf16>
    %80 = vector.shape_cast %79 : vector<1x8x8xbf16> to vector<8x8xbf16>
    %cst_87 = arith.constant dense<0.000000e+00> : vector<64x8xf32>
    %81 = tpu.matmul %55, %80, %cst_87 {dimension_numbers = #tpu.dot_dimension_numbers<[1], [0], [0], [1], [0, 0, 1, 1], [], []>} : vector<64x8xbf16>, vector<8x8xbf16>, vector<64x8xf32> -> vector<64x8xf32>
    %82 = arith.addf %78, %81 : vector<64x8xf32>
    %c5 = arith.constant 5 : index
    %c0_88 = arith.constant 0 : index
    %c0_89 = arith.constant 0 : index
    %83 = vector.load %arg7[%c5, %c0_88, %c0_89] : memref<9x8x8xbf16, #tpu.memory_space<vmem>>, vector<1x8x8xbf16>
    %84 = vector.shape_cast %83 : vector<1x8x8xbf16> to vector<8x8xbf16>
    %cst_90 = arith.constant dense<0.000000e+00> : vector<64x8xf32>
    %85 = tpu.matmul %57, %84, %cst_90 {dimension_numbers = #tpu.dot_dimension_numbers<[1], [0], [0], [1], [0, 0, 1, 1], [], []>} : vector<64x8xbf16>, vector<8x8xbf16>, vector<64x8xf32> -> vector<64x8xf32>
    %86 = arith.addf %82, %85 : vector<64x8xf32>
    %c6 = arith.constant 6 : index
    %c0_91 = arith.constant 0 : index
    %c0_92 = arith.constant 0 : index
    %87 = vector.load %arg7[%c6, %c0_91, %c0_92] : memref<9x8x8xbf16, #tpu.memory_space<vmem>>, vector<1x8x8xbf16>
    %88 = vector.shape_cast %87 : vector<1x8x8xbf16> to vector<8x8xbf16>
    %cst_93 = arith.constant dense<0.000000e+00> : vector<64x8xf32>
    %89 = tpu.matmul %59, %88, %cst_93 {dimension_numbers = #tpu.dot_dimension_numbers<[1], [0], [0], [1], [0, 0, 1, 1], [], []>} : vector<64x8xbf16>, vector<8x8xbf16>, vector<64x8xf32> -> vector<64x8xf32>
    %90 = arith.addf %86, %89 : vector<64x8xf32>
    %c7_94 = arith.constant 7 : index
    %c0_95 = arith.constant 0 : index
    %c0_96 = arith.constant 0 : index
    %91 = vector.load %arg7[%c7_94, %c0_95, %c0_96] : memref<9x8x8xbf16, #tpu.memory_space<vmem>>, vector<1x8x8xbf16>
    %92 = vector.shape_cast %91 : vector<1x8x8xbf16> to vector<8x8xbf16>
    %cst_97 = arith.constant dense<0.000000e+00> : vector<64x8xf32>
    %93 = tpu.matmul %61, %92, %cst_97 {dimension_numbers = #tpu.dot_dimension_numbers<[1], [0], [0], [1], [0, 0, 1, 1], [], []>} : vector<64x8xbf16>, vector<8x8xbf16>, vector<64x8xf32> -> vector<64x8xf32>
    %94 = arith.addf %90, %93 : vector<64x8xf32>
    %c8_98 = arith.constant 8 : index
    %c0_99 = arith.constant 0 : index
    %c0_100 = arith.constant 0 : index
    %95 = vector.load %arg7[%c8_98, %c0_99, %c0_100] : memref<9x8x8xbf16, #tpu.memory_space<vmem>>, vector<1x8x8xbf16>
    %96 = vector.shape_cast %95 : vector<1x8x8xbf16> to vector<8x8xbf16>
    %cst_101 = arith.constant dense<0.000000e+00> : vector<64x8xf32>
    %97 = tpu.matmul %63, %96, %cst_101 {dimension_numbers = #tpu.dot_dimension_numbers<[1], [0], [0], [1], [0, 0, 1, 1], [], []>} : vector<64x8xbf16>, vector<8x8xbf16>, vector<64x8xf32> -> vector<64x8xf32>
    %98 = arith.addf %94, %97 : vector<64x8xf32>
    %c0_102 = arith.constant 0 : index
    %c0_103 = arith.constant 0 : index
    %99 = vector.load %arg8[%c0_102, %c0_103] : memref<1x8xf32, #tpu.memory_space<vmem>>, vector<1x8xf32>
    %100 = vector.broadcast %99 : vector<1x8xf32> to vector<64x8xf32>
    %101 = arith.addf %98, %100 : vector<64x8xf32>
    %cst_104 = arith.constant 0.000000e+00 : f32
    %102 = vector.broadcast %cst_104 : f32 to vector<64x8xf32>
    %103 = arith.maximumf %101, %102 : vector<64x8xf32>
    %104 = arith.truncf %103 : vector<64x8xf32> to vector<64x8xbf16>
    %c0_105 = arith.constant 0 : index
    %c0_106 = arith.constant 0 : index
    %105 = vector.load %arg9[%c0_105, %c0_106] : memref<8x32xbf16, #tpu.memory_space<vmem>>, vector<8x32xbf16>
    %cst_107 = arith.constant dense<0.000000e+00> : vector<64x32xf32>
    %106 = tpu.matmul %104, %105, %cst_107 {dimension_numbers = #tpu.dot_dimension_numbers<[1], [0], [0], [1], [0, 0, 1, 1], [], []>} : vector<64x8xbf16>, vector<8x32xbf16>, vector<64x32xf32> -> vector<64x32xf32>
    %107 = arith.extf %2 : vector<64x32xbf16> to vector<64x32xf32>
    %c0_108 = arith.constant 0 : index
    %c0_109 = arith.constant 0 : index
    %108 = vector.load %arg10[%c0_108, %c0_109] : memref<1x32xf32, #tpu.memory_space<vmem>>, vector<1x32xf32>
    %109 = vector.broadcast %108 : vector<1x32xf32> to vector<64x32xf32>
    %110 = arith.addf %106, %109 : vector<64x32xf32>
    %111 = arith.addf %110, %107 : vector<64x32xf32>
    %cst_110 = arith.constant 0.000000e+00 : f32
    %112 = vector.broadcast %cst_110 : f32 to vector<64x32xf32>
    %113 = arith.maximumf %111, %112 : vector<64x32xf32>
    %114 = vector.shape_cast %113 : vector<64x32xf32> to vector<1x8x8x32xf32>
    %c0_111 = arith.constant 0 : index
    %c0_112 = arith.constant 0 : index
    %c0_113 = arith.constant 0 : index
    %c0_114 = arith.constant 0 : index
    %c0_115 = arith.constant 0 : index
    %115 = vector.load %arg11[%c0_111, %c0_112, %c0_113, %c0_114, %c0_115] : memref<1x1x8x8x32xf32, #tpu.memory_space<vmem>>, vector<1x1x8x8x32xf32>
    %116 = vector.shape_cast %115 : vector<1x1x8x8x32xf32> to vector<1x8x8x32xf32>
    %117 = vector.shape_cast %114 : vector<1x8x8x32xf32> to vector<1x1x8x8x32xf32>
    tpu.vector_store %arg11[%c0_111, %c0_112, %c0_113, %c0_114, %c0_115], %117 {strides = array<i32>} : memref<1x1x8x8x32xf32, #tpu.memory_space<vmem>>, vector<1x1x8x8x32xf32>,
    return
  }
  func.func @transform_0(%arg0: i32, %arg1: i32) -> (i32, i32, i32, i32, i32) {
    %c-1_i32 = arith.constant -1 : i32
    %0 = arith.addi %arg0, %c-1_i32 : i32
    %c0_i32 = arith.constant 0 : i32
    %c3_i32 = arith.constant 3 : i32
    %1 = arith.maxsi %c0_i32, %0 : i32
    %2 = arith.minsi %c3_i32, %1 : i32
    %c0_i32_0 = arith.constant 0 : i32
    %c0_i32_1 = arith.constant 0 : i32
    %c0_i32_2 = arith.constant 0 : i32
    %c0_i32_3 = arith.constant 0 : i32
    return %2, %arg1, %c0_i32_0, %c0_i32_1, %c0_i32_2 : i32, i32, i32, i32, i32
  }
  func.func @transform_1(%arg0: i32, %arg1: i32) -> (i32, i32, i32, i32, i32) {
    %c0_i32 = arith.constant 0 : i32
    %0 = arith.addi %arg0, %c0_i32 : i32
    %c0_i32_0 = arith.constant 0 : i32
    %c3_i32 = arith.constant 3 : i32
    %1 = arith.maxsi %c0_i32_0, %0 : i32
    %2 = arith.minsi %c3_i32, %1 : i32
    %c0_i32_1 = arith.constant 0 : i32
    %c0_i32_2 = arith.constant 0 : i32
    %c0_i32_3 = arith.constant 0 : i32
    %c0_i32_4 = arith.constant 0 : i32
    return %2, %arg1, %c0_i32_1, %c0_i32_2, %c0_i32_3 : i32, i32, i32, i32, i32
  }
  func.func @transform_2(%arg0: i32, %arg1: i32) -> (i32, i32, i32, i32, i32) {
    %c1_i32 = arith.constant 1 : i32
    %0 = arith.addi %arg0, %c1_i32 : i32
    %c0_i32 = arith.constant 0 : i32
    %c3_i32 = arith.constant 3 : i32
    %1 = arith.maxsi %c0_i32, %0 : i32
    %2 = arith.minsi %c3_i32, %1 : i32
    %c0_i32_0 = arith.constant 0 : i32
    %c0_i32_1 = arith.constant 0 : i32
    %c0_i32_2 = arith.constant 0 : i32
    %c0_i32_3 = arith.constant 0 : i32
    return %2, %arg1, %c0_i32_0, %c0_i32_1, %c0_i32_2 : i32, i32, i32, i32, i32
  }
  func.func @transform_3(%arg0: i32, %arg1: i32) -> (i32, i32, i32) {
    %c0_i32 = arith.constant 0 : i32
    %c0_i32_0 = arith.constant 0 : i32
    %c0_i32_1 = arith.constant 0 : i32
    %c0_i32_2 = arith.constant 0 : i32
    return %c0_i32, %c0_i32_0, %c0_i32_1 : i32, i32, i32
  }
  func.func @transform_4(%arg0: i32, %arg1: i32) -> (i32, i32) {
    %c0_i32 = arith.constant 0 : i32
    %c0_i32_0 = arith.constant 0 : i32
    %c0_i32_1 = arith.constant 0 : i32
    return %c0_i32, %c0_i32_0 : i32, i32
  }
  func.func @transform_5(%arg0: i32, %arg1: i32) -> (i32, i32, i32) {
    %c0_i32 = arith.constant 0 : i32
    %c0_i32_0 = arith.constant 0 : i32
    %c0_i32_1 = arith.constant 0 : i32
    %c0_i32_2 = arith.constant 0 : i32
    return %c0_i32, %c0_i32_0, %c0_i32_1 : i32, i32, i32
  }
  func.func @transform_6(%arg0: i32, %arg1: i32) -> (i32, i32) {
    %c0_i32 = arith.constant 0 : i32
    %c0_i32_0 = arith.constant 0 : i32
    %c0_i32_1 = arith.constant 0 : i32
    return %c0_i32, %c0_i32_0 : i32, i32
  }
  func.func @transform_7(%arg0: i32, %arg1: i32) -> (i32, i32) {
    %c0_i32 = arith.constant 0 : i32
    %c0_i32_0 = arith.constant 0 : i32
    %c0_i32_1 = arith.constant 0 : i32
    return %c0_i32, %c0_i32_0 : i32, i32
  }
  func.func @transform_8(%arg0: i32, %arg1: i32) -> (i32, i32) {
    %c0_i32 = arith.constant 0 : i32
    %c0_i32_0 = arith.constant 0 : i32
    %c0_i32_1 = arith.constant 0 : i32
    return %c0_i32, %c0_i32_0 : i32, i32
  }
  func.func @transform_9(%arg0: i32, %arg1: i32) -> (i32, i32, i32, i32, i32) {
    %c0_i32 = arith.constant 0 : i32
    %c0_i32_0 = arith.constant 0 : i32
    %c0_i32_1 = arith.constant 0 : i32
    %c0_i32_2 = arith.constant 0 : i32
    return %arg0, %arg1, %c0_i32, %c0_i32_0, %c0_i32_1 : i32, i32, i32, i32, i32
  }
}

</mosaic_0001>

<bundles_post_ra>
// kernel: tpu_custom_call.1
= control target key start
LH: loop header
LB: loop body
LE: loop exit
PB: predicated region body
PF: predicated region fallthrough
CT: control target
= control target key end

     0   :  { %s4290_s0 = inlined_call_operand.hbm [shape: bf16[4,2,8,8,32], index: 0, kind: input, shape index: {}]   ;;  %s4291_s1 = inlined_call_operand.hbm [shape: bf16[4,2,8,8,32], index: 1, kind: input, shape index: {}]   ;;  %s4292_s2 = inlined_call_operand.hbm [shape: bf16[4,2,8,8,32], index: 2, kind: input, shape index: {}]   ;;  %s4293_s3 = inlined_call_operand.vmem [shape: bf16[3,32,8], index: 3, kind: input, shape index: {}]   ;;  %s4294_s4 = inlined_call_operand.vmem [shape: f32[1,8], index: 4, kind: input, shape index: {}]   ;;  %s4295_s5 = inlined_call_operand.vmem [shape: bf16[9,8,8], index: 5, kind: input, shape index: {}]   ;;  %s4296_s6 = inlined_call_operand.vmem [shape: f32[1,8], index: 6, kind: input, shape index: {}]   ;;  %s4297_s7 = inlined_call_operand.vmem [shape: bf16[8,32], index: 7, kind: input, shape index: {}]   ;;  %s4298_s8 = inlined_call_operand.vmem [shape: f32[1,32], index: 8, kind: input, shape index: {}]   ;;  %s4299_s9 = inlined_call_operand.hbm [shape: f32[4,2,8,8,32], index: 9, kind: output, shape index: {}]  }
   0x1   :  { %4333 = sst [smem:[#allocation31_spill]] %s4290_s0 }
   0x2   :  { %4334 = sst [smem:[#allocation32_spill]] %s4291_s1 }
   0x3   :  { %4335 = sst [smem:[#allocation33_spill]] %s4292_s2 }
   0x4   :  { %4336 = sst [smem:[#allocation34_spill]] %s4293_s3 }
   0x5   :  { %4337 = sst [smem:[#allocation35_spill]] %s4294_s4 }
   0x6   :  { %4338 = sst [smem:[#allocation36_spill]] %s4295_s5 }
   0x7   :  { %4339 = sst [smem:[#allocation37_spill]] %s4296_s6 }
   0x8   :  { %4340 = sst [smem:[#allocation38_spill]] %s4297_s7 }
   0x9   :  { %4341 = sst [smem:[#allocation39_spill]] %s4298_s8 }
   0xa   :  { %4342 = sst [smem:[#allocation40_spill]] %s4299_s9 }
   0xb   :  { %14 = vsyncpa [#allocation4], 0 }
   0xc   :  { %16 = vsyncpa [#allocation4 + $0x1], 0 }
   0xd   :  { %17 = vsyncpa [#allocation7], 0 }
   0xe   :  { %19 = vsyncpa [#allocation7 + $0x1], 0 }
   0xf   :  { %20 = vsyncpa [#allocation5], 0 }
  0x10   :  { %22 = vsyncpa [#allocation5 + $0x1], 0  ;;  %s3186_s30 = smov 0   ;;  %s3188_s10 = smov 0  }
  0x11   :  { %s3190_s11 = smov 0   ;;  %s3192_s12 = smov 0  }
  0x12   :  { %s3194_s13 = smov 0   ;;  %s3196_s14 = smov 0  }
  0x13   :  { %s3198_s15 = smov 0   ;;  %s3200_s16 = smov 0  }
  0x14   :  { %s3202_s17 = smov 0   ;;  %s3204_s18 = smov 0  }
  0x15   :  { %s3206_s19 = smov 0   ;;  %s3208_s20 = smov 0  }
  0x16   :  { %s3210_s21 = smov 0   ;;  %s3212_s22 = smov 0  }
  0x17   :  { %s3214_s23 = smov 0   ;;  %s3216_s24 = smov 0  }
  0x18   :  { %s3218_s25 = smov 0  }
  0x19 LB: > { %4343 = sst [smem:[#allocation14_spill]] %s3065_s30  ;;  %s3272_s26 = sadd.s32 4294967295, %s3129_s25   ;;  %s3129_s25 = sphi %s3218_s25, %s28_s25   ;;  %s3125_s24 = sphi %s3216_s24, %s4429_s24   ;;  %s3121_s23 = sphi %s3214_s23, %s4419_s23   ;;  %s3117_s22 = sphi %s3212_s22, %s4418_s22   ;;  %s3113_s21 = sphi %s3210_s21, %s4417_s21   ;;  %s3109_s20 = sphi %s3208_s20, %s4416_s20   ;;  %s3105_s19 = sphi %s3206_s19, %s4428_s19   ;;  %s3101_s18 = sphi %s3204_s18, %s4427_s18   ;;  %s3097_s17 = sphi %s3202_s17, %s4414_s17   ;;  %s3093_s16 = sphi %s3200_s16, %s4413_s16   ;;  %s3089_s15 = sphi %s3198_s15, %s4412_s15   ;;  %s3085_s14 = sphi %s3196_s14, %s4426_s14   ;;  %s3081_s13 = sphi %s3194_s13, %s4425_s13   ;;  %s3077_s12 = sphi %s3192_s12, %s4424_s12   ;;  %s3073_s11 = sphi %s3190_s11, %s4423_s11   ;;  %s3069_s10 = sphi %s3188_s10, %s4422_s10   ;;  %s3065_s30 = sphi %s3186_s30, %s4421_s30  }
  0x1a   : > { %4344 = sst [smem:[#allocation15_spill]] %s3073_s11  ;;  %s37_s28 = sadd.s32 1, %s3121_s23 }
  0x1b   : > { %4345 = sst [smem:[#allocation16_spill]] %s3093_s16  ;;  %s3277_s29 = sadd.s32 1, %s3125_s24 }
  0x1c   : > { %4346 = sst [smem:[#allocation17_spill]] %s3097_s17  ;;  %p38_p0 = scmp.ge.s32.totalorder %s37_s28, 2 }
  0x1d   : > { %4347 = sst [smem:[#allocation18_spill]] %s3109_s20  ;;  %p67_p1 = scmp.eq.s32.totalorder %s3129_s25, 0 }
  0x1e   : > { %4348 = sst [smem:[#allocation19_spill]] %s3113_s21  ;;  %p73_p2 = scmp.eq.s32.totalorder %s3272_s26, 0 }
  0x1f   : > { %4349 = sst [smem:[#allocation20_spill]] %s3117_s22  ;;  %p82_p3 = scmp.gt.s32.totalorder %s3125_s24, 0 }
  0x20   : > { %4350 = sst [smem:[#allocation21_spill]] %s3121_s23  ;;  %s4431_s28 = smov (%p38_p0, %s37_s28), 0 }
  0x21   : > { %4351 = sst [smem:[#allocation22_spill]] %s3125_s24  ;;  %s3288_s27 = ssub.s32 %s3121_s23, %s4431_s28 }
  0x22   : > { %4352 = sst [smem:[#allocation23_spill]] %s4431_s28  ;;  %p2367_p4 = scmp.lt.s32.totalorder %s3125_s24, 3 }
  0x23   : > { %s41_s9 = scalar_select %p38_p0, %s3277_s29, %s3125_s24 }
  0x24   : > { %s95_s21 = sadd.s32 1, %s3097_s17  ;;  %p102_p8 = scmp.ne.s32.totalorder %s3097_s17, %s3093_s16 }
  0x25   : > { %p42_p5 = scmp.ge.s32.totalorder %s41_s9, 4  ;;  %p108_p9 = scmp.ne.s32.totalorder %s3093_s16, %s3089_s15 }
  0x26   : > { %s83_s8 = scalar_select %p82_p3, %s3125_s24, 0 }
  0x27   : > { %s4433_s9 = smov (%p42_p5, %s41_s9), 0  ;;  %p3306_p10 = por %p102_p8, %p67_p1 }
  0x28   : > { %4353 = sst [smem:[#allocation24_spill]] %s4433_s9  ;;  %s4435_s8 = smov (!%p2367_p4, %s83_s8), 3 }
  0x29   : > { %p86_p6 = scmp.gt.s32.totalorder %s4433_s9, 0  ;;  %p2372_p7 = scmp.lt.s32.totalorder %s4433_s9, 3 }
  0x2a   : > { %p3312_p11 = por %p108_p9, %p73_p2  ;;  %s282_s4 = ssub.s32 %s3125_s24, %s4433_s9 }
  0x2b   : > { %s87_s28 = scalar_select %p86_p6, %s4433_s9, 0 }
  0x2c   : > { %s4355_s7 = scalar_select %p3312_p11, 1, 0 }
  0x2d   : > { %s4437_s28 = smov (!%p2372_p7, %s87_s28), 3  ;;  %s287_s5 = sadd.s32 1, %s3073_s11 }
  0x2e   : > { %4356 = sst [smem:[#allocation25_spill]] %s4355_s7  ;;  %s90_s15 = ssub.s32 %s4435_s8, %s4437_s28 }
  0x2f   : > { %s284_s22 = sor.u32 %s282_s4, %s3288_s27  ;;  %s92_s3 = sor.u32 %s90_s15, %s3288_s27 }
  0x30   : > { %p285_p12 = scmp.eq.s32.totalorder %s284_s22, 0  ;;  %p93_p13 = scmp.eq.s32.totalorder %s92_s3, 0 }
  0x31   : > { %p297_p0 = scmp.ne.s32.totalorder %s3073_s11, %s3069_s10  ;;  %p298_p3 = scmp.eq.s32.totalorder %s3272_s26, 7 }
  0x32   : > { %s3325_s16 = scalar_select %p285_p12, %s3073_s11, %s287_s5  }
  0x33   : > { %s3328_s2 = scalar_select %p93_p13, %s3097_s17, %s95_s21  }
  0x34   : > { %4357 = sst [smem:[#allocation26_spill]] %s3325_s16  ;;  %p303_p4 = scmp.ne.s32.totalorder %s3069_s10, %s3065_s30 }
  0x35   : > { %4358 = sst [smem:[#allocation27_spill]] %s3328_s2  ;;  %s4359_s7 = sadd.s32 4294967294, %s3129_s25  }
  0x36   : > { %p304_p5 = scmp.eq.s32.totalorder %s4359_s7, 7  ;;  %p3335_p6 = por %p298_p3, %p297_p0 }
  0x37   : > { %p4320_p7 = scmp.lt.s32.totalorder %s3129_s25, 8  ;;  %s3345_s3 = sshll.u32 %s3121_s23, 3 }
  0x38   : > { %s4360_s0 = scalar_select %p3335_p6, 1, 0 }
  0x39   : > { %p3340_p8 = por %p304_p5, %p303_p4  ;;  %s371_s5 = sand.u32 1, %s3129_s25  }
  0x3a   : > { %4361 = sst [smem:[#allocation28_spill]] %s4360_s0  ;;  %s373_s21 = sand.u32 1, %s3097_s17  }
  0x3b   : > { %s4362_s4 = scalar_select %p3340_p8, 1, 0 }
  0x3c   : > { %s2398_s22 = sshll.u32 %s373_s21, 5  ;;  %s2405_s28 = sshll.u32 %s4435_s8, 4 }
  0x3d   : > { %4363 = sst [smem:[#allocation29_spill]] %s4362_s4  ;;  %s384_s15 = sadd.s32 %s2405_s28, %s3345_s3 }
  0x3e   : > { %s375_s7 = scalar_lea.vmem [#allocation6], %s2398_s22  ;;  %s2406_s16 = sshll.u32 %s384_s15, 2 }
  0x3f   : > { %s389_s2 = sshll.u32 %s375_s7, 4  ;;  %s4364_s1 = sld [smem:[#allocation32_spill]]  ;;  %s390_s2 = int_to_ptr.vmem [resolvable:$true] %s389_s2 }
  0x40   : > { %p2705_p9 = pnand %p4320_p7, %p3306_p10  ;;  %p2416_p12 = scmp.ge.s32.totalorder %s3129_s25, 1 }
  0x41   : > { %s3359_s8 = scalar_lea.sflag [#allocation7], %s371_s5  ;;  %s4314_s21 = smov 64  }
  0x42   : > { %s4316_s22 = smov 4   ;;  %p426_p10 = scmp.lt.s32.totalorder %s3129_s25, 9 }
  0x43   : > { %s44_s6 = sadd.s32 4294967295, %s3125_s24  ;;  %s49_s30 = sadd.s32 4294967295, %s4433_s9 }
  0x44   : > { %p3366_p13 = pnand %p2416_p12, %p426_p10  ;;  %p45_p0 = scmp.gt.s32.totalorder %s44_s6, 0 }
  0x45   : > { %s386_s0 = scalar_lea.hbm %s4364_s1, %s2406_s16  ;;  %p50_p3 = scmp.gt.s32.totalorder %s49_s30, 0 }
  0x46   : > { %s387_s23 = sshll.u32 %s386_s0, 4  ;;  %s4439_s6 = smov (!%p45_p0, %s44_s6), 0  ;;  %s388_s23 = int_to_ptr.hbm [resolvable:$true] %s387_s23 }
  0x47   : > { %2707 = dma.hbm_to_vmem [thread:$0]  (!%p2705_p9), %s388_s23, 512, %s390_s2, %s3359_s8, %s4314_s21, %s4314_s21, %s4316_s22  }
  0x48   : > { %s4441_s30 = smov (!%p50_p3, %s49_s30), 0  ;;  %s59_s11 = sadd.s32 1, %s3109_s20 }
  0x49   : > { %p66_p4 = scmp.ne.s32.totalorder %s3109_s20, %s3105_s19  ;;  %s54_s16 = ssub.s32 %s4439_s6, %s4441_s30 }
  0x4a   : > { %p72_p5 = scmp.ne.s32.totalorder %s3105_s19, %s3101_s18  ;;  %s56_s2 = sor.u32 %s3288_s27, %s54_s16 }
  0x4b   : > { %p3380_p9 = por %p67_p1, %p66_p4  ;;  %p57_p12 = scmp.eq.s32.totalorder %s56_s2, 0 }
  0x4c   : > { %p3386_p10 = por %p73_p2, %p72_p5  ;;  %s342_s28 = sand.u32 1, %s3109_s20  }
  0x4d   : > { %s2396_s15 = sshll.u32 %s4439_s6, 4  ;;  %s2389_s7 = sshll.u32 %s342_s28, 5 }
  0x4e   : > { %s3392_s18 = scalar_select %p57_p12, %s3109_s20, %s59_s11  }
  0x4f   : > { %s356_s30 = sadd.s32 %s2396_s15, %s3345_s3  ;;  %s346_s2 = scalar_lea.vmem [#allocation3], %s2389_s7 }
  0x50   : > { %4368 = sst [smem:[#allocation30_spill]] %s3392_s18  ;;  %s2397_s16 = sshll.u32 %s356_s30, 2 }
  0x51   : > { %s361_s21 = sshll.u32 %s346_s2, 4  ;;  %s4369_s24 = sld [smem:[#allocation31_spill]]  ;;  %s362_s21 = int_to_ptr.vmem [resolvable:$true] %s361_s21 }
  0x52   : > { %p2702_p0 = pnand %p4320_p7, %p3380_p9  ;;  %s343_s11 = scalar_lea.sflag [#allocation4], %s342_s28 }
  0x53   : > { %s4370_s15 = smov 4   ;;  %s4371_s30 = smov 64  }
  0x54   : > { %p2377_p3 = scmp.lt.s32.totalorder %s3277_s29, 3  ;;  %s123_s7 = sadd.s32 1, %s4433_s9 }
  0x55   : > { %s133_s2 = sadd.s32 1, %s3085_s14  ;;  %p2382_p4 = scmp.lt.s32.totalorder %s123_s7, 3 }
  0x56   : > { %s4443_s29 = smov (!%p2377_p3, %s3277_s29), 3  ;;  %p140_p5 = scmp.ne.s32.totalorder %s3085_s14, %s3081_s13 }
  0x57   : > { %s358_s17 = scalar_lea.hbm %s4369_s24, %s2397_s16  ;;  %p146_p12 = scmp.ne.s32.totalorder %s3081_s13, %s3077_s12 }
  0x58   : > { %s359_s6 = sshll.u32 %s358_s17, 4  ;;  %s4445_s7 = smov (!%p2382_p4, %s123_s7), 3  ;;  %s360_s6 = int_to_ptr.hbm [resolvable:$true] %s359_s6 }
  0x59   : > { %2704 = dma.hbm_to_vmem [thread:$0]  (!%p2702_p0), %s360_s6, 512, %s362_s21, %s343_s11, %s4371_s30, %s4371_s30, %s4370_s15  }
  0x5a   : > { %p3415_p9 = por %p140_p5, %p67_p1  ;;  %p3421_p7 = por %p146_p12, %p73_p2 }
  0x5b   : > { %s128_s24 = ssub.s32 %s4443_s29, %s4445_s7  ;;  %s401_s21 = sand.u32 1, %s3085_s14  }
  0x5c   : > { %s130_s22 = sor.u32 %s128_s24, %s3288_s27  ;;  %s2407_s23 = sshll.u32 %s401_s21, 5 }
  0x5d   : > { %p131_p0 = scmp.eq.s32.totalorder %s130_s22, 0  ;;  %s2414_s28 = sshll.u32 %s4443_s29, 4 }
  0x5e   : > { %s403_s16 = scalar_lea.vmem [#allocation8], %s2407_s23  ;;  %s413_s11 = sadd.s32 %s2414_s28, %s3345_s3 }
  0x5f   : > { %s418_s12 = sshll.u32 %s403_s16, 4  ;;  %s2415_s9 = sshll.u32 %s413_s11, 2  ;;  %s419_s12 = int_to_ptr.vmem [resolvable:$true] %s418_s12 }
  0x60   : > { %s3428_s6 = scalar_select %p131_p0, %s3085_s14, %s133_s2  }
  0x61   : > { %p4374_p1 = scmp.lt.s32.totalorder %s3129_s25, 8  ;;  %s4376_s7 = sld [smem:[#allocation33_spill]] }
  0x63   : > { %p3435_p3 = pnand %p4374_p1, %p3415_p9 }
  0x65   : > { %p2925_p4 = pneg %p3435_p3 }
  0x67   : > { %s415_s27 = scalar_lea.hbm %s4376_s7, %s2415_s9  ;;  %s2928_s21 = scalar_lea.hbm %s4376_s7, 256 }
  0x68   : > { %s416_s24 = sshll.u32 %s415_s27, 4  ;;  %s417_s24 = int_to_ptr.hbm [resolvable:$true] %s416_s24 }
  0x69   : > { %s2921_s29 = sshra.s32 %s417_s24, 4  ;;  %s2922_s29 = int_to_ptr.hbm [resolvable:$true] %s2921_s29 }
  0x6a   : > { %s2923_s2 = scalar_lea.hbm %s2922_s29, 32 }
  0x6b   : > { %p2924_p2 = scmp.ne.s32.totalorder %s2922_s29, %s2923_s2  ;;  %p2930_p9 = scmp.lt.s32.totalorder %s2928_s21, %s2923_s2 }
  0x6d   : > { %p2926_p5 = pnand %p2925_p4, %p2924_p2 }
  0x6f   : > { %p2927_p12 = pneg %p2926_p5 }
  0x71   : > { %p2932_p0 = pnand %p2930_p9, %p2927_p12 }
  0x73   : > { %2935 = shalt.err (!%p2932_p0)
}
  0x74   : > { %2710 = dma.hbm_to_vmem [thread:$0]  (!%p3435_p3), %s417_s24, 512, %s419_s12, %s3359_s8, %s4371_s30, %s4371_s30, %s4370_s15  }
  0x75   : > { %430 = sbr.rel (%p3366_p13) target bundleno = 793 (0x319), region = 56  ;;  %s432_s9 = sand.u32 (!%p3366_p13), 1, %s3105_s19  }
  0x76   : > { %s2417_s20 = sshll.u32 (!%p3366_p13), %s432_s9, 5  ;;  %s433_s4 = scalar_lea.sflag (!%p3366_p13), [#allocation4], %s432_s9 }
  0x77   : > { %s3456_s22 = scalar_lea.vmem (!%p3366_p13), [#allocation3], %s2417_s20 }
  0x7a   : > { %3048 = dma.done.wait (%p3386_p10), %s433_s4, 512  }
  0x7b   : > { %3050 = vsyncadd (%p3386_p10), %s433_s4, 4294966784  ;;  %s4377_s18 = sld [smem:[#allocation16_spill]]  ;;  %s442_s28 = sand.u32 1, %s3272_s26  }
  0x7c   : > { %s443_s0 = scalar_lea.sflag [#allocation7], %s442_s28 }
  0x81   : > { %s444_s8 = sand.u32 1, %s4377_s18  }
  0x82   : > { %s2418_s15 = sshll.u32 %s444_s8, 5 }
  0x83   : > { %s3464_s30 = scalar_lea.vmem [#allocation6], %s2418_s15 }
  0x84   : > { %3052 = dma.done.wait (%p3312_p11), %s443_s0, 512  }
  0x85   : > { %3054 = vsyncadd (%p3312_p11), %s443_s0, 4294966784  ;;  %s454_s16 = sand.u32 1, %s3081_s13  }
  0x86   : > { %s2419_s12 = sshll.u32 %s454_s16, 5 }
  0x87   : > { %s3471_s5 = scalar_lea.vmem [#allocation8], %s2419_s12 }
  0x88   : > { %3056 = dma.done.wait (%p3421_p7), %s443_s0, 512  }
  0x89   : > { %3058 = vsyncadd (%p3421_p7), %s443_s0, 4294966784  ;;  %s4379_s27 = sld [smem:[#allocation34_spill]]  ;;  %v2668_v5 = vld [vmem:[%s3456_s22 + $0x18] sm:$0xff]  ;;  %v2671_v6 = vld [vmem:[%s3471_s5] sm:$0xff]  ;;  %vm581_vm0 = vcmask 261120   ;;  %vm843_vm1 = vcmask 60416  }
  0x8a   : > { %v2665_v7 = vld [vmem:[%s3456_s22] sm:$0xff]  ;;  %v2672_v10 = vld [vmem:[%s3471_s5 + $0x8] sm:$0xff]  ;;  %s4380_s18 = sld [smem:[#allocation20_spill]]  ;;  %v2673_v13 = vld [vmem:[%s3471_s5 + $0x10] sm:$0xff]  ;;  %v3133_v18 = vmov 0   ;;  %vm1526_vm2 = vcmask 1043456  }
  0x8b   : > { %v2659_v9 = vld [vmem:[%s3464_s30] sm:$0xff]  ;;  %v2666_v11 = vld [vmem:[%s3456_s22 + $0x8] sm:$0xff]  ;;  %v2667_v14 = vld [vmem:[%s3456_s22 + $0x10] sm:$0xff]  ;;  %848 = vst.msk [vmem:[#allocation2 + $0x10] sm:$0xf] %vm843_vm1, %v3133_v18  ;;  %s4386_s1 = sld [smem:[#allocation35_spill]] }
  0x8c   : > { %v2660_v12 = vld [vmem:[%s3464_s30 + $0x8] sm:$0xff]  ;;  %v2661_v15 = vld [vmem:[%s3464_s30 + $0x10] sm:$0xff]  ;;  %v2674_v16 = vld [vmem:[%s3471_s5 + $0x18] sm:$0xff]  ;;  %844 = vst.msk [vmem:[#allocation2] sm:$0xf] %vm843_vm1, %v3133_v18  ;;  %s4385_s5 = sld [smem:[#allocation36_spill]] }
  0x8d   : > { %v2662_v17 = vld [vmem:[%s3464_s30 + $0x18] sm:$0xff]  ;;  %845 = vst.msk [vmem:[#allocation2 + $0x4] sm:$0xf] %vm843_vm1, %v3133_v18  ;;  %vm1513_vm3 = vcmask 64512   ;;  %vm899_vm4 = vsmask.f32 256 }
  0x8e   : > { %846 = vst.msk [vmem:[#allocation2 + $0x8] sm:$0xf] %vm843_vm1, %v3133_v18  ;;  %vm900_vm5 = vsmask.f32 4368  ;;  %vm1014_vm7 = vsmask.f32 3328 }
  0x8f   : > { %v2670_v0 = vld [vmem:[%s4379_s27 + $0x8] sm:$0xff]  ;;  %v2669_v2 = vld [vmem:[%s4379_s27] sm:$0xff]  ;;  %v2664_v4 = vld [vmem:[%s4379_s27 + $0x18] sm:$0xff]  ;;  %847 = vst.msk [vmem:[#allocation2 + $0xc] sm:$0xf] %vm843_vm1, %v3133_v18  ;;  %s4400_s3 = sld [smem:[#allocation38_spill]] }
  0x90   : > { %v2676_v1 = vld [vmem:[%s4379_s27 + $0x28] sm:$0xff]  ;;  %2689 = vmatpush.bf16.msra.mxu1 %v2670_v0  ;;  %v2675_v3 = vld [vmem:[%s4379_s27 + $0x20] sm:$0xff]  ;;  %600 = vmatpush.bf16.msra.mxu0 %v2670_v0  ;;  %v2663_v8 = vld [vmem:[%s4379_s27 + $0x10] sm:$0xff]  ;;  %s530_s23 = sadd.s32 4294967295, %s4380_s18  ;;  %s705_s28 = sadd.s32 1, %s4380_s18 }
  0x91   : > { %775 = vmatpush.bf16.msra.mxu2 %v2676_v1  ;;  %p3523_p11 = scmp.ge.s32.totalorder %s530_s23, 0  ;;  %p3527_p7 = scmp.lt.s32.totalorder %s530_s23, 4  ;;  %849 = vst.msk [vmem:[#allocation2 + $0x14] sm:$0xf] %vm843_vm1, %v3133_v18  ;;  %v3608_v33 = vld [vmem:[%s4386_s1] ss:$0 sm:$0xff]  ;;  %vm3666_vm6 = vmor %vm899_vm4, %vm900_vm5 }
  0x92   : > { %p3533_p13 = scmp.ge.s32.totalorder %s705_s28, 0  ;;  %p3537_p10 = scmp.lt.s32.totalorder %s705_s28, 4  ;;  %850 = vst.msk [vmem:[#allocation2 + $0x18] sm:$0xf] %vm843_vm1, %v3133_v18  ;;  %v2539_v20 = vld [vmem:[%s4385_s5 + $0x4] sm:$0xf] }
  0x93   : > { %p533_p1 = pnand %p3527_p7, %p3523_p11  ;;  %851 = vst.msk [vmem:[#allocation2 + $0x1c] sm:$0xf] %vm843_vm1, %v3133_v18  ;;  %v1528_v22 = vsel %vm1526_vm2, %v2539_v20, 0  ;;  %v2569_v34 = vld [vmem:[%s4385_s5 + $0xc] sm:$0xf]  ;;  %s4401_s21 = sld [smem:[#allocation37_spill]] }
  0x94   : > { %2690 = vmatpush.bf16.msra.mxu1 %v2669_v2  ;;  %601 = vmatpush.bf16.msra.mxu0 %v2669_v2  ;;  %p708_p3 = pnand %p3537_p10, %p3533_p13  ;;  %852 = vst.msk [vmem:[#allocation2 + $0x20] sm:$0xf] %vm843_vm1, %v3133_v18  ;;  %v1708_v35 = vsel %vm1526_vm2, %v2569_v34, 0  ;;  %v2542_v54 = vld [vmem:[#allocation2 + $0x4] sm:$0xf]  ;;  %s4402_s4 = sld [smem:[#allocation39_spill]] }
  0x95   : > { %776 = vmatpush.bf16.msra.mxu2 %v2675_v3  ;;  %s2425_s26 = scalar_select %p533_p1, 0, 1  ;;  %853 = vst.msk [vmem:[#allocation2 + $0x24] sm:$0xf] %vm843_vm1, %v3133_v18  ;;  %2692 = vmatpush.bf16.msra.mxu3 %v1528_v22  ;;  %v2564_v55 = vld [vmem:[%s4385_s5 + $0x8] sm:$0xf] }
  0x96   : > { %s2482_s11 = scalar_select %p708_p3, 0, 1  ;;  %854 = vst.msk [vmem:[#allocation2 + $0x28] sm:$0xf] %vm843_vm1, %v3133_v18  ;;  %v1642_v58 = vsel %vm1526_vm2, %v2564_v55, 0 }
  0x97   : > { %2453 = vmatmul.msk.bf16.vlgmr.msra.gmra.mxu1 %vm581_vm0, %v2668_v5  ;;  %2450 = vmatmul.msk.bf16.vlgmr.msra.gmra.mxu0 %vm581_vm0, %v2665_v7  ;;  %855 = vst.msk [vmem:[#allocation2 + $0x2c] sm:$0xf] %vm843_vm1, %v3133_v18  ;;  %s536_s24 = scvt.s32.f32 %s2425_s26  ;;  %v1089_v0 = vld [vmem:[#allocation2 + $0xc] sm:$0x8]  ;;  %v3643_v1 = vld [vmem:[#allocation2 + $0x4] sm:$0xf] }
  0x98   : > { %682 = vmatpush.bf16.msrb.mxu1 %v2664_v4  ;;  %2511 = vmatmul.msk.bf16.vlgmr.msra.gmra.mxu2 %vm581_vm0, %v2671_v6  ;;  %856 = vst.msk [vmem:[#allocation2 + $0x30] sm:$0xf] %vm843_vm1, %v3133_v18  ;;  %s711_s29 = scvt.s32.f32 %s2482_s11  ;;  %v1106_v7 = vshrl.u32 %v1089_v0, 16  ;;  %vm1015_vm8 = vsmask.f32 7440  ;;  %s499_s23 = sand.u32 1, %s3069_s10  }
  0x99   : > { %2691 = vmatpush.bf16.msrb.mxu2 %v1528_v22  ;;  %1537 = vmatpush.bf16.msrb.mxu0 %v1528_v22  ;;  %857 = vst.msk [vmem:[#allocation2 + $0x34] sm:$0xf] %vm843_vm1, %v3133_v18  ;;  %v3589_v26 = vstv %s536_s24  ;;  %v1091_v4 = vld [vmem:[#allocation2 + $0x18] sm:$0x8]  ;;  %vm3706_vm9 = vmor %vm1014_vm7, %vm1015_vm8  ;;  %s2420_s28 = sshll.u32 %s499_s23, 6  ;;  %s4403_s8 = sld [smem:[#allocation19_spill]] }
  0x9a   : > { %858 = vst.msk [vmem:[#allocation2 + $0x38] sm:$0xf] %vm843_vm1, %v3133_v18  ;;  %v3591_v27 = vstv %s711_s29  ;;  %s4190_s22 = scalar_lea.vmem [#allocation9], %s2420_s28  ;;  %s2637_s0 = sshll.u32 %s4380_s18, 4 }
  0x9b   : > { %859 = vst.msk [vmem:[#allocation2 + $0x3c] sm:$0xf] %vm843_vm1, %v3133_v18  ;;  %s4404_s11 = sld [smem:[#allocation40_spill]]  ;;  %s2213_s18 = sshll.u32 %s4190_s22, 4  ;;  %s2214_s18 = int_to_ptr.vmem [resolvable:$true] %s2213_s18 }
  0x9c   : > { %683 = vmatpush.bf16.msrb.mxu1 %v2663_v8  ;;  %860 = vst.msk [vmem:[#allocation2 + $0x40] sm:$0xf] %vm843_vm1, %v3133_v18  ;;  %s2199_s1 = scalar_lea.sflag [#allocation5], %s499_s23 }
  0x9d   : > { %861 = vst.msk [vmem:[#allocation2 + $0x44] sm:$0xf] %vm843_vm1, %v3133_v18  ;;  %1651 = vmatpush.bf16.msra.mxu0 %v1642_v58 }
  0x9e   : > { %862 = vst.msk [vmem:[#allocation2 + $0x48] sm:$0xf] %vm843_vm1, %v3133_v18 }
  0x9f   : > { %863 = vst.msk [vmem:[#allocation2 + $0x4c] sm:$0xf] %vm843_vm1, %v3133_v18  ;;  %s2636_s15 = sshll.u32 %s4403_s8, 3 }
  0xa0   : > { %864 = vst.msk [vmem:[#allocation2 + $0x50] sm:$0xf] %vm843_vm1, %v3133_v18  ;;  %1717 = vmatpush.bf16.msra.mxu1 %v1708_v35  ;;  %s2210_s16 = sadd.s32 %s2637_s0, %s2636_s15 }
  0xa1   : > { %865 = vst.msk [vmem:[#allocation2 + $0x54] sm:$0xf] %vm843_vm1, %v3133_v18  ;;  %s2638_s12 = sshll.u32 %s2210_s16, 3  ;;  %s4405_s29 = smov %s4404_s11 }
  0xa2   : > { %866 = vst.msk [vmem:[#allocation2 + $0x58] sm:$0xf] %vm843_vm1, %v3133_v18  ;;  %s2212_s2 = scalar_lea.hbm %s4404_s11, %s2638_s12 }
  0xa3   : > { %867 = vst.msk [vmem:[#allocation2 + $0x5c] sm:$0xf] %vm843_vm1, %v3133_v18 }
  0xa4   : > { %868 = vst.msk [vmem:[#allocation2 + $0x60] sm:$0xf] %vm843_vm1, %v3133_v18 }
  0xa5   : > { %869 = vst.msk [vmem:[#allocation2 + $0x64] sm:$0xf] %vm843_vm1, %v3133_v18 }
  0xa6   : > { %870 = vst.msk [vmem:[#allocation2 + $0x68] sm:$0xf] %vm843_vm1, %v3133_v18 }
  0xa7   : > { %2478 = vmatmul.msk.bf16.vlgmr.msrb.gmra.mxu1 %vm581_vm0, %v2659_v9  ;;  %2451 = vmatmul.msk.bf16.gmra.mxu0 %vm581_vm0, %v2666_v11  ;;  %871 = vst.msk [vmem:[#allocation2 + $0x6c] sm:$0xf] %vm843_vm1, %v3133_v18 }
  0xa8   : > { %2512 = vmatmul.msk.bf16.gmra.mxu2 %vm581_vm0, %v2672_v10  ;;  %872 = vst.msk [vmem:[#allocation2 + $0x70] sm:$0xf] %vm843_vm1, %v3133_v18  ;;  %v908_v10 = vshrl.u32 %v3643_v1, 16 }
  0xa9   : > { %873 = vst.msk [vmem:[#allocation2 + $0x74] sm:$0xf] %vm843_vm1, %v3133_v18 }
  0xb7   : > { %2479 = vmatmul.msk.bf16.gmra.mxu1 %vm581_vm0, %v2660_v12  ;;  %2452 = vmatmul.msk.bf16.gmra.mxu0 %vm581_vm0, %v2667_v14  ;;  %v911_v14 = vshll.u32 %v3643_v1, 16 }
  0xb8   : > { %2513 = vmatmul.msk.bf16.gmra.mxu2 %vm581_vm0, %v2673_v13  ;;  %v1119_v13 = vshrl.u32 %v1091_v4, 16 }
  0xb9   : > { %v1018_v34 = vrot.slane %v911_v14, 5 }
  0xc7   : > { %2480 = vmatmul.msk.bf16.gmra.mxu1 %vm581_vm0, %v2661_v15 }
  0xc8   : > { %2514 = vmatmul.msk.bf16.gmra.mxu2 %vm581_vm0, %v2674_v16 }
  0xd7   : > { %2481 = vmatmul.msk.bf16.gmra.mxu1 %vm581_vm0, %v2662_v17 }
 0x114   : > { %v3553_v19 = vpop.f32.mrf.mxu1  ;;  %v603_v21 = vpop.f32.mrf.mxu0 }
 0x115   : > { %v624_v28 = vmul.f32 %v3589_v26, %v603_v21 }
 0x11b   : > { %v778_v23 = vpop.f32.mrf.mxu2 }
 0x11c   : > { %v3579_v24 = vpop.f32.mrf.mxu1  ;;  %v605_v25 = vpop.f32.mrf.mxu0  ;;  %v799_v30 = vmul.f32 %v3591_v27, %v778_v23 }
 0x11d   : > { %v625_v39 = vmul.f32 %v3589_v26, %v605_v25  ;;  %v2523_v25 = vrot.slane %v1106_v7, 11 }
 0x123   : > { %v780_v29 = vpop.f32.mrf.mxu2 }
 0x124   : > { %v685_v31 = vpop.f32.mrf.mxu1  ;;  %v608_v37 = vpop.f32.mrf.mxu0  ;;  %v800_v44 = vmul.f32 %v3591_v27, %v780_v29 }
 0x125   : > { %v686_v32 = vadd.f32 %v685_v31, %v624_v28  ;;  %v626_v48 = vmul.f32 %v3589_v26, %v608_v37  ;;  %v2524_v31 = vrot.slane %v1119_v13, 11  ;;  %v1490_v13 = vld [vmem:[%s4385_s5] sm:$0xf] }
 0x127   : > { %v807_v36 = vadd.f32 %v799_v30, %v686_v32  ;;  %v1017_v32 = vrot.slane %v908_v10, 4 }
 0x129   : > { %v819_v38 = vadd.f32 %v3608_v33, %v807_v36 }
 0x12b   : > { %v783_v40 = vpop.f32.mrf.mxu2  ;;  %v827_v41 = vmax.f32 %v819_v38, 0.0 }
 0x12c   : > { %v687_v42 = vpop.f32.mrf.mxu1  ;;  %v610_v49 = vpop.f32.mrf.mxu0  ;;  %v801_v52 = vmul.f32 %v3591_v27, %v783_v40 }
 0x12d   : > { %v835_v43 = vpack.c.bf16 %v827_v41, %v827_v41  ;;  %v688_v45 = vadd.f32 %v687_v42, %v625_v39  ;;  %v627_v3 = vmul.f32 %v3589_v26, %v610_v49  ;;  %v1006_v39 = vld [vmem:[#allocation2 + $0x8] sm:$0x1] }
 0x12f   : > { %875 = vst.msk [vmem:[#allocation2 + $0x10] sm:$0xf] %vm843_vm1, %v835_v43  ;;  %v808_v46 = vadd.f32 %v800_v44, %v688_v45 }
 0x131   : > { %v820_v47 = vadd.f32 %v3608_v33, %v808_v46  ;;  %v1007_v46 = vld [vmem:[#allocation2 + $0x14] sm:$0x1] }
 0x133   : > { %v785_v50 = vpop.f32.mrf.mxu2  ;;  %v828_v51 = vmax.f32 %v820_v47, 0.0 }
 0x134   : > { %v690_v53 = vpop.f32.mrf.mxu1  ;;  %v613_v6 = vpop.f32.mrf.mxu0  ;;  %v802_v16 = vmul.f32 %v3591_v27, %v785_v50 }
 0x135   : > { %v836_v56 = vpack.c.bf16 %v828_v51, %v828_v51  ;;  %v691_v57 = vadd.f32 %v690_v53, %v626_v48  ;;  %v628_v36 = vmul.f32 %v3589_v26, %v613_v6  ;;  %v1019_v48 = vor.u32 %v1018_v34, %v1017_v32 }
 0x136   : > { %v2677_v59 = vld [vmem:[#allocation2 + $0xc] sm:$0xf0]  ;;  %v1022_v53 = vshll.u32 %v1006_v39, 16 }
 0x137   : > { %v3639_v60 = vld [vmem:[#allocation2 + $0x10] sm:$0xf]  ;;  %876 = vst.msk [vmem:[#allocation2 + $0x1c] sm:$0xf] %vm843_vm1, %v836_v56  ;;  %v809_v61 = vadd.f32 %v801_v52, %v691_v57  ;;  %v2543_v62 = vor.u32 %v2677_v59, %v2542_v54 }
 0x138   : > { %v1111_v63 = vshrl.u32 %v3639_v60, 16  ;;  %v3650_v9 = vld [vmem:[#allocation2 + $0x10] sm:$0xf]  ;;  %v1114_v18 = vshll.u32 %v3639_v60, 16 }
 0x139   : > { %v821_v2 = vadd.f32 %v3608_v33, %v809_v61  ;;  %2556 = vmatmul.msk.bf16.vlgmr.msrb.gmra.mxu0 %vm1513_vm3, %v2543_v62  ;;  %v921_v21 = vshrl.u32 %v3650_v9, 16  ;;  %v924_v22 = vshll.u32 %v3650_v9, 16  ;;  %v2574_v54 = vld [vmem:[%s4385_s5 + $0x10] sm:$0xf]  ;;  %v1031_v61 = vshll.u32 %v1007_v46, 16 }
 0x13a   : > { %v1113_v8 = vrot.slane %v1111_v63, 7  ;;  %v1782_v0 = vsel %vm1526_vm2, %v2574_v54, 0 }
 0x13b   : > { %v829_v5 = vmax.f32 %v821_v2, 0.0  ;;  %v788_v12 = vpop.f32.mrf.mxu2  ;;  %v1026_v40 = vrot.slane %v921_v21, 4  ;;  %v1027_v41 = vrot.slane %v924_v22, 5  ;;  %1791 = vmatpush.bf16.msra.mxu2 %v1782_v0  ;;  %v1033_v32 = vrot.slane %v1031_v61, 5  ;;  %v1008_v0 = vld [vmem:[#allocation2 + $0x20] sm:$0x1] }
 0x13c   : > { %v692_v11 = vpop.f32.mrf.mxu1  ;;  %v1116_v28 = vor.u32 %v1114_v18, %v1113_v8  ;;  %v803_v43 = vmul.f32 %v3591_v27, %v788_v12  ;;  %v615_v57 = vpop.f32.mrf.mxu0  ;;  %v1095_v12 = vld [vmem:[#allocation2 + $0x30] sm:$0x8] }
 0x13d   : > { %v837_v15 = vpack.c.bf16 %v829_v5, %v829_v5  ;;  %v693_v17 = vadd.f32 %v692_v11, %v627_v3  ;;  %v1028_v4 = vor.u32 %v1027_v41, %v1026_v40  ;;  %v1093_v5 = vld [vmem:[#allocation2 + $0x24] sm:$0x8]  ;;  %v629_v11 = vmul.f32 %v3589_v26, %v615_v57 }
 0x13e   : > { %v3656_v20 = vld [vmem:[#allocation2 + $0x1c] sm:$0xf]  ;;  %v1117_v44 = vsel %vm3666_vm6, %v2523_v25, %v1116_v28 }
 0x13f   : > { %877 = vst.msk [vmem:[#allocation2 + $0x28] sm:$0xf] %vm843_vm1, %v837_v15  ;;  %v810_v23 = vadd.f32 %v802_v16, %v693_v17  ;;  %v1124_v29 = vshrl.u32 %v3656_v20, 16  ;;  %v1127_v38 = vshll.u32 %v3656_v20, 16  ;;  %v2546_v51 = vld [vmem:[#allocation2 + $0x1c] sm:$0xf]  ;;  %v1683_v58 = vunpack.c.l.b16 %v1117_v44 }
 0x140   : > { %v1020_v15 = vrot.slane %v1019_v48, 4  ;;  %v1024_v16 = vrot.slane %v1022_v53, 5  ;;  %v1132_v17 = vshrl.u32 %v1093_v5, 16  ;;  %v630_v53 = vmul.f32 %v3589_v26, %v3553_v19  ;;  %v3899_v60 = vld [vmem:[#allocation2 + $0x1c] sm:$0xf] }
 0x141   : > { %v822_v35 = vadd.f32 %v3608_v33, %v810_v23  ;;  %v1126_v37 = vrot.slane %v1124_v29, 7  ;;  %v1584_v23 = vsel %vm1526_vm2, %v1490_v13, 0 }
 0x142   : > { %1593 = vmatpush.bf16.msrb.mxu3 %v1584_v23  ;;  %v1025_v44 = vsel %vm3706_vm9, %v1020_v15, %v1024_v16  ;;  %v2525_v46 = vrot.slane %v1132_v17, 11  ;;  %v1040_v15 = vshll.u32 %v1008_v0, 16 }
 0x143   : > { %v830_v42 = vmax.f32 %v822_v35, 0.0  ;;  %v1129_v45 = vor.u32 %v1127_v38, %v1126_v37  ;;  %v790_v55 = vpop.f32.mrf.mxu2  ;;  %v3712_v35 = vld [vmem:[#allocation2 + $0x1c] sm:$0xf]  ;;  %v1145_v37 = vshrl.u32 %v1095_v12, 16 }
 0x144   : > { %v695_v47 = vpop.f32.mrf.mxu1  ;;  %v804_v40 = vmul.f32 %v3591_v27, %v790_v55  ;;  %v937_v48 = vshll.u32 %v3712_v35, 16 }
 0x145   : > { %v838_v49 = vpack.c.bf16 %v830_v42, %v830_v42  ;;  %v696_v50 = vadd.f32 %v695_v47, %v628_v36  ;;  %v1130_v52 = vsel %vm3666_vm6, %v2524_v31, %v1129_v45  ;;  %v1029_v31 = vrot.slane %v1028_v4, 4  ;;  %v1009_v4 = vld [vmem:[#allocation2 + $0x2c] sm:$0x1] }
 0x146   : > { %v2678_v56 = vld [vmem:[#allocation2 + $0x24] sm:$0xf0]  ;;  %v1684_v59 = vunpack.c.l.b16 %v1130_v52  ;;  %v934_v47 = vshrl.u32 %v3712_v35, 16  ;;  %v1036_v5 = vrot.slane %v937_v48, 5  ;;  %v1227_v35 = vrot.slane %v1127_v38, 5 }
 0x147   : > { %v3693_v62 = vld [vmem:[#allocation2 + $0x28] sm:$0xf]  ;;  %878 = vst.msk [vmem:[#allocation2 + $0x34] sm:$0xf] %vm843_vm1, %v838_v49  ;;  %v811_v2 = vadd.f32 %v803_v43, %v696_v50  ;;  %v2547_v3 = vor.u32 %v2678_v56, %v2546_v51  ;;  %v1034_v50 = vsel %vm3706_vm9, %v1029_v31, %v1033_v32  ;;  %v1049_v32 = vshll.u32 %v1009_v4, 16 }
 0x148   : > { %v1137_v6 = vshrl.u32 %v3693_v62, 16  ;;  %v1691_v7 = vpack.c.b16 %v1684_v59, %v1683_v58  ;;  %v1140_v42 = vshll.u32 %v3693_v62, 16  ;;  %v3716_v43 = vld [vmem:[#allocation2 + $0x28] sm:$0xf]  ;;  %v2526_v58 = vrot.slane %v1145_v37, 11 }
 0x149   : > { %v823_v8 = vadd.f32 %v3608_v33, %v811_v2  ;;  %2557 = vmatmul.msk.bf16.gmra.mxu0 %vm1513_vm3, %v2547_v3  ;;  %v947_v55 = vshrl.u32 %v3716_v43, 16  ;;  %v950_v56 = vshll.u32 %v3716_v43, 16  ;;  %v1617_v2 = vunpack.c.l.b16 %v1025_v44  ;;  %v2685_v38 = vld [vmem:[#allocation2 + $0x24] sm:$0xf0] }
 0x14a   : > { %2570 = vmatmul.msk.bf16.vlgmr.msra.gmra.mxu1 %vm1513_vm3, %v1691_v7  ;;  %v1139_v34 = vrot.slane %v1137_v6, 7  ;;  %v1618_v3 = vunpack.c.l.b16 %v1034_v50  ;;  %v1035_v19 = vrot.slane %v934_v47, 4 }
 0x14b   : > { %v831_v25 = vmax.f32 %v823_v8, 0.0  ;;  %v793_v54 = vpop.f32.mrf.mxu2  ;;  %v1044_v16 = vrot.slane %v947_v55, 4  ;;  %v1045_v17 = vrot.slane %v950_v56, 5 }
 0x14c   : > { %v697_v36 = vpop.f32.mrf.mxu1  ;;  %v1142_v51 = vor.u32 %v1140_v42, %v1139_v34  ;;  %v805_v8 = vmul.f32 %v3591_v27, %v793_v54  ;;  %v1097_v34 = vld [vmem:[#allocation2 + $0x3c] sm:$0x8]  ;;  %v1625_v50 = vpack.c.b16 %v1618_v3, %v1617_v2  ;;  %v2626_v2 = vld [vmem:[%s4385_s5 + $0x20] sm:$0xf]  ;;  %v631_v3 = vmul.f32 %v3589_v26, %v3579_v24 }
 0x14d   : > { %v839_v39 = vpack.c.bf16 %v831_v25, %v831_v25  ;;  %v698_v41 = vadd.f32 %v697_v36, %v629_v11 }
 0x14e   : > { %v3720_v45 = vld [vmem:[#allocation2 + $0x34] sm:$0xf]  ;;  %v1143_v11 = vsel %vm3666_vm6, %v2525_v46, %v1142_v51  ;;  %v1099_v51 = vld [vmem:[#allocation2 + $0x48] sm:$0x8] }
 0x14f   : > { %879 = vst.msk [vmem:[#allocation2 + $0x40] sm:$0xf] %vm843_vm1, %v839_v39  ;;  %v812_v49 = vadd.f32 %v804_v40, %v698_v41  ;;  %v1150_v52 = vshrl.u32 %v3720_v45, 16  ;;  %v1153_v61 = vshll.u32 %v3720_v45, 16  ;;  %v2550_v36 = vld [vmem:[#allocation2 + $0x34] sm:$0xf]  ;;  %v1685_v39 = vunpack.c.l.b16 %v1143_v11 }
 0x150   : > { %v1037_v41 = vor.u32 %v1036_v5, %v1035_v19  ;;  %v1051_v19 = vrot.slane %v1049_v32, 5  ;;  %v1158_v5 = vshrl.u32 %v1097_v34, 16  ;;  %v3779_v34 = vld [vmem:[#allocation2 + $0x34] sm:$0xf]  ;;  %v895_v45 = vld [vmem:[#allocation2 + $0x48] sm:$0x8] }
 0x151   : > { %v824_v57 = vadd.f32 %v3608_v33, %v812_v49  ;;  %v1152_v59 = vrot.slane %v1150_v52, 7 }
 0x152   : > { %v1038_v4 = vrot.slane %v1037_v41, 4  ;;  %v883_v41 = vld [vmem:[#allocation2] sm:$0x8] }
 0x153   : > { %v832_v7 = vmax.f32 %v824_v57, 0.0  ;;  %v1155_v12 = vor.u32 %v1153_v61, %v1152_v59  ;;  %v1046_v57 = vor.u32 %v1045_v17, %v1044_v16  ;;  %v1042_v59 = vrot.slane %v1040_v15, 5  ;;  %v795_v0 = vpop.f32.mrf.mxu2 }
 0x154   : > { %v700_v13 = vpop.f32.mrf.mxu1  ;;  %v2054_v17 = vsel %vm1526_vm2, %v2626_v2, 0  ;;  %v903_v2 = vshrl.u32 %v883_v41, 16 }
 0x155   : > { %v840_v23 = vpack.c.bf16 %v832_v7, %v832_v7  ;;  %v701_v25 = vadd.f32 %v700_v13, %v630_v53  ;;  %v1156_v31 = vsel %vm3666_vm6, %v2526_v58, %v1155_v12  ;;  %v1171_v7 = vshrl.u32 %v1099_v51, 16  ;;  %v2600_v12 = vld [vmem:[%s4385_s5 + $0x18] sm:$0xf]  ;;  %v2605_v13 = vld [vmem:[%s4385_s5 + $0x1c] sm:$0xf] }
 0x156   : > { %v2679_v37 = vld [vmem:[#allocation2 + $0x3c] sm:$0xf0]  ;;  %v1686_v40 = vunpack.c.l.b16 %v1156_v31  ;;  %v1047_v16 = vrot.slane %v1046_v57, 4  ;;  %v1988_v24 = vsel %vm1526_vm2, %v2605_v13, 0  ;;  %v885_v51 = vld [vmem:[#allocation2 + $0xc] sm:$0x8] }
 0x157   : > { %v3753_v44 = vld [vmem:[#allocation2 + $0x40] sm:$0xf]  ;;  %880 = vst.msk [vmem:[#allocation2 + $0x4c] sm:$0xf] %vm843_vm1, %v840_v23  ;;  %v813_v46 = vadd.f32 %v805_v8, %v701_v25  ;;  %v2551_v49 = vor.u32 %v2679_v37, %v2550_v36  ;;  %v1914_v23 = vsel %vm1526_vm2, %v2600_v12, 0  ;;  %v806_v25 = vmul.f32 %v3591_v27, %v795_v0  ;;  %1997 = vmatpush.bf16.msrb.mxu1 %v1988_v24 }
 0x158   : > { %v4327_v53 = vshrl.u32 %v3753_v44, 16  ;;  %v1692_v54 = vpack.c.b16 %v1686_v40, %v1685_v39  ;;  %v4326_v32 = vshll.u32 %v3753_v44, 16  ;;  %v3781_v36 = vld [vmem:[#allocation2 + $0x40] sm:$0xf]  ;;  %1923 = vmatpush.bf16.msrb.mxu0 %v1914_v23  ;;  %v1043_v37 = vsel %vm3706_vm9, %v1038_v4, %v1042_v59  ;;  %v2681_v24 = vld [vmem:[#allocation2 + $0x18] sm:$0xf0] }
 0x159   : > { %v825_v58 = vadd.f32 %v3608_v33, %v813_v46  ;;  %2558 = vmatmul.msk.bf16.vlgmr.msrb.gmra.mxu2 %vm1513_vm3, %v2551_v49  ;;  %2565 = vmatmul.msk.bf16.vlgmr.msra.gmra.mxu0 %vm1513_vm3, %v1625_v50  ;;  %v2527_v40 = vrot.slane %v1158_v5, 11  ;;  %v2528_v49 = vrot.slane %v1171_v7, 11  ;;  %v960_v57 = vshrl.u32 %v3779_v34, 16 }
 0x15a   : > { %2571 = vmatmul.msk.bf16.gmra.mxu1 %vm1513_vm3, %v1692_v54  ;;  %v1165_v11 = vrot.slane %v4327_v53, 7  ;;  %2063 = vmatpush.bf16.msrb.mxu2 %v2054_v17  ;;  %v1052_v54 = vsel %vm3706_vm9, %v1047_v16, %v1051_v19  ;;  %v976_v59 = vshll.u32 %v3781_v36, 16  ;;  %v963_v7 = vshll.u32 %v3779_v34, 16  ;;  %v1011_v16 = vld [vmem:[#allocation2 + $0x44] sm:$0x1] }
 0x15b   : > { %v833_v8 = vmax.f32 %v825_v58, 0.0  ;;  %v973_v58 = vshrl.u32 %v3781_v36, 16  ;;  %v916_v19 = vshrl.u32 %v885_v51, 16  ;;  %v1619_v13 = vunpack.c.l.b16 %v1043_v37  ;;  %v1101_v53 = vld [vmem:[#allocation2 + $0x54] sm:$0x8] }
 0x15c   : > { %v702_v15 = vpop.f32.mrf.mxu1  ;;  %v1168_v46 = vor.u32 %v4326_v32, %v1165_v11  ;;  %v1620_v11 = vunpack.c.l.b16 %v1052_v54  ;;  %v1054_v37 = vrot.slane %v963_v7, 5 }
 0x15d   : > { %v841_v26 = vpack.c.bf16 %v833_v8, %v833_v8  ;;  %v703_v31 = vadd.f32 %v702_v15, %v631_v3  ;;  %v910_v3 = vrot.slane %v908_v10, 7  ;;  %v923_v15 = vrot.slane %v921_v21, 7  ;;  %v2595_v21 = vld [vmem:[%s4385_s5 + $0x14] sm:$0xf] }
 0x15e   : > { %v3785_v39 = vld [vmem:[#allocation2 + $0x4c] sm:$0xf]  ;;  %v1169_v12 = vsel %vm3666_vm6, %v2527_v40, %v1168_v46  ;;  %v1062_v17 = vrot.slane %v973_v58, 4  ;;  %v1063_v10 = vrot.slane %v976_v59, 5  ;;  %v1626_v54 = vpack.c.b16 %v1620_v11, %v1619_v13 }
 0x15f   : > { %881 = vst.msk [vmem:[#allocation2 + $0x58] sm:$0xf] %vm843_vm1, %v841_v26  ;;  %v814_v27 = vadd.f32 %v806_v25, %v703_v31  ;;  %v4325_v50 = vshrl.u32 %v3785_v39, 16  ;;  %v4324_v5 = vshll.u32 %v3785_v39, 16  ;;  %v1010_v25 = vld [vmem:[#allocation2 + $0x38] sm:$0x1]  ;;  %v913_v11 = vor.u32 %v911_v14, %v910_v3 }
 0x160   : > { %v1053_v31 = vrot.slane %v960_v57, 4  ;;  %v2554_v40 = vld [vmem:[#allocation2 + $0x4c] sm:$0xf]  ;;  %v1848_v32 = vsel %vm1526_vm2, %v2595_v21, 0  ;;  %v926_v21 = vor.u32 %v924_v22, %v923_v15 }
 0x161   : > { %v826_v0 = vadd.f32 %v3608_v33, %v814_v27  ;;  %v1178_v4 = vrot.slane %v4325_v50, 7  ;;  %v1687_v27 = vunpack.c.l.b16 %v1169_v12  ;;  %v1064_v50 = vor.u32 %v1063_v10, %v1062_v17 }
 0x162   : > { %v2515_v12 = vrot.slane %v903_v2, 11  ;;  %v1055_v13 = vor.u32 %v1054_v37, %v1053_v31  ;;  %v1184_v17 = vshrl.u32 %v1101_v53, 16 }
 0x163   : > { %v834_v8 = vmax.f32 %v826_v0, 0.0  ;;  %v1181_v33 = vor.u32 %v4324_v5, %v1178_v4  ;;  %v2577_v0 = vld [vmem:[#allocation2 + $0x10] sm:$0xf]  ;;  %v1067_v4 = vshll.u32 %v1011_v16, 16  ;;  %v1058_v16 = vshll.u32 %v1010_v25, 16 }
 0x164   : > { %v914_v14 = vsel %vm3666_vm6, %v2515_v12, %v913_v11  ;;  %v2529_v31 = vrot.slane %v1184_v17, 11 }
 0x165   : > { %v842_v23 = vpack.c.bf16 %v834_v8, %v834_v8  ;;  %v1182_v26 = vsel %vm3666_vm6, %v2528_v49, %v1181_v33  ;;  %v2578_v33 = vor.u32 %v2681_v24, %v2577_v0  ;;  %v887_v24 = vld [vmem:[#allocation2 + $0x18] sm:$0x8]  ;;  %v1060_v53 = vrot.slane %v1058_v16, 5 }
 0x166   : > { %v2680_v41 = vld [vmem:[#allocation2 + $0x54] sm:$0xf0]  ;;  %v1688_v46 = vunpack.c.l.b16 %v1182_v26  ;;  %v2516_v26 = vrot.slane %v916_v19, 11  ;;  %v929_v25 = vshrl.u32 %v887_v24, 16  ;;  %v3847_v19 = vld [vmem:[#allocation2 + $0x4c] sm:$0xf] }
 0x167   : > { %v3822_v51 = vld [vmem:[#allocation2 + $0x58] sm:$0xf]  ;;  %882 = vst.msk [vmem:[#allocation2 + $0x64] sm:$0xf] %vm843_vm1, %v842_v23  ;;  %v2555_v49 = vor.u32 %v2680_v41, %v2554_v40  ;;  %v1103_v23 = vld [vmem:[#allocation2 + $0x60] sm:$0x8] }
 0x168   : > { %v4331_v8 = vshrl.u32 %v3822_v51, 16  ;;  %v1693_v5 = vpack.c.b16 %v1688_v46, %v1687_v27  ;;  %v1065_v40 = vrot.slane %v1064_v50, 4  ;;  %v1069_v41 = vrot.slane %v1067_v4, 5  ;;  %v3838_v1 = vld [vmem:[#allocation2 + $0x58] sm:$0xf] }
 0x169   : > { %2559 = vmatmul.msk.bf16.vlgmr.msra.gmra.mxu3 %vm1513_vm3, %v2555_v49  ;;  %2566 = vmatmul.msk.bf16.gmra.mxu0 %vm1513_vm3, %v1626_v54  ;;  %v1197_v2 = vshrl.u32 %v1103_v23, 16  ;;  %v889_v50 = vld [vmem:[#allocation2 + $0x24] sm:$0x8]  ;;  %v927_v15 = vsel %vm3666_vm6, %v2516_v26, %v926_v21  ;;  %v999_v27 = vshrl.u32 %v3838_v1, 16  ;;  %v4332_v46 = vshll.u32 %v3838_v1, 16 }
 0x16a   : > { %2591 = vmatmul.msk.bf16.vlgmr.msra.gmra.mxu2 %vm1513_vm3, %v2578_v33  ;;  %2572 = vmatmul.msk.bf16.gmra.mxu1 %vm1513_vm3, %v1693_v5  ;;  %v1191_v10 = vrot.slane %v4331_v8, 7  ;;  %v4330_v5 = vshll.u32 %v3822_v51, 16  ;;  %v1070_v37 = vsel %vm3706_vm9, %v1065_v40, %v1069_v41  ;;  %v1559_v49 = vunpack.c.l.b16 %v914_v14  ;;  %v3858_v33 = vld [vmem:[#allocation2 + $0x18] sm:$0x8]  ;;  %v2682_v26 = vld [vmem:[#allocation2 + $0x30] sm:$0xf0] }
 0x16b   : > { %1857 = vmatpush.bf16.msra.mxu3 %v1848_v32  ;;  %v1056_v32 = vrot.slane %v1055_v13, 4  ;;  %v2530_v54 = vrot.slane %v1197_v2, 11  ;;  %v942_v11 = vshrl.u32 %v889_v50, 16  ;;  %v986_v13 = vshrl.u32 %v3847_v19, 16 }
 0x16c   : > { %v1194_v9 = vor.u32 %v4330_v5, %v1191_v10  ;;  %v989_v16 = vshll.u32 %v3847_v19, 16  ;;  %v1560_v23 = vunpack.c.l.b16 %v927_v15  ;;  %v1622_v17 = vunpack.c.l.b16 %v1070_v37  ;;  %v1012_v37 = vld [vmem:[#allocation2 + $0x50] sm:$0x1] }
 0x16d   : > { %v1061_v12 = vsel %vm3706_vm9, %v1056_v32, %v1060_v53  ;;  %v2517_v21 = vrot.slane %v929_v25, 11  ;;  %v1080_v40 = vrot.slane %v999_v27, 4  ;;  %v1081_v41 = vrot.slane %v4332_v46, 5  ;;  %v2581_v25 = vld [vmem:[#allocation2 + $0x28] sm:$0xf] }
 0x16e   : > { %v3842_v3 = vld [vmem:[#allocation2 + $0x64] sm:$0xf]  ;;  %v1195_v10 = vsel %vm3666_vm6, %v2529_v31, %v1194_v9  ;;  %v1307_v2 = vshrl.u32 %v3858_v33, 16  ;;  %v1621_v14 = vunpack.c.l.b16 %v1061_v12  ;;  %v936_v53 = vrot.slane %v934_v47, 7  ;;  %v1013_v9 = vld [vmem:[#allocation2 + $0x5c] sm:$0x1] }
 0x16f   : > { %v4329_v22 = vshrl.u32 %v3842_v3, 16  ;;  %v4328_v4 = vshll.u32 %v3842_v3, 16  ;;  %v949_v31 = vrot.slane %v947_v55, 7  ;;  %v1689_v50 = vunpack.c.l.b16 %v1195_v10  ;;  %v891_v55 = vld [vmem:[#allocation2 + $0x30] sm:$0x8] }
 0x170   : > { %v1072_v33 = vrot.slane %v989_v16, 5  ;;  %v1567_v12 = vpack.c.b16 %v1560_v23, %v1559_v49  ;;  %v1082_v5 = vor.u32 %v1081_v41, %v1080_v40  ;;  %v1085_v8 = vshll.u32 %v1013_v9, 16  ;;  %v893_v46 = vld [vmem:[#allocation2 + $0x3c] sm:$0x8] }
 0x171   : > { %v1204_v0 = vrot.slane %v4329_v22, 7  ;;  %v1209_v22 = vld [vmem:[#allocation2 + $0x14] sm:$0x1]  ;;  %v1217_v10 = vrot.slane %v1111_v63, 4  ;;  %v952_v49 = vor.u32 %v950_v56, %v949_v31  ;;  %v1218_v23 = vrot.slane %v1114_v18, 5 }
 0x172   : > { %v1210_v63 = vld [vmem:[#allocation2 + $0x20] sm:$0x1]  ;;  %v968_v43 = vshrl.u32 %v893_v46, 16  ;;  %v1083_v40 = vrot.slane %v1082_v5, 4  ;;  %v1087_v41 = vrot.slane %v1085_v8, 5  ;;  %v975_v8 = vrot.slane %v973_v58, 7 }
 0x173   : > { %v1207_v24 = vor.u32 %v4328_v4, %v1204_v0  ;;  %v1071_v0 = vrot.slane %v986_v13, 4  ;;  %v1627_v4 = vpack.c.b16 %v1622_v17, %v1621_v14  ;;  %v1219_v56 = vor.u32 %v1218_v23, %v1217_v10 }
 0x174   : > { %v1312_v5 = vshrl.u32 %v3899_v60, 16 }
 0x175   : > { %v1208_v32 = vsel %vm3666_vm6, %v2530_v54, %v1207_v24  ;;  %v2582_v54 = vor.u32 %v2682_v26, %v2581_v25  ;;  %v2518_v24 = vrot.slane %v942_v11, 11  ;;  %v1076_v11 = vshll.u32 %v1012_v37, 16 }
 0x176   : > { %v1690_v15 = vunpack.c.l.b16 %v1208_v32  ;;  %v939_v32 = vor.u32 %v937_v48, %v936_v53  ;;  %v1073_v17 = vor.u32 %v1072_v33, %v1071_v0  ;;  %v1222_v26 = vshll.u32 %v1209_v22, 16  ;;  %v2608_v33 = vld [vmem:[#allocation2 + $0x1c] sm:$0xf] }
 0x177   : > { %v955_v48 = vshrl.u32 %v891_v55, 16  ;;  %v953_v22 = vsel %vm3666_vm6, %v2518_v24, %v952_v49  ;;  %v1220_v31 = vrot.slane %v1219_v56, 4  ;;  %v1078_v20 = vrot.slane %v1076_v11, 5  ;;  %v1211_v55 = vld [vmem:[#allocation2 + $0x2c] sm:$0x1] }
 0x178   : > { %v1694_v47 = vpack.c.b16 %v1690_v15, %v1689_v50  ;;  %v1224_v18 = vrot.slane %v1222_v26, 5  ;;  %v940_v53 = vsel %vm3666_vm6, %v2517_v21, %v939_v32  ;;  %v1074_v9 = vrot.slane %v1073_v17, 4  ;;  %v2683_v17 = vld [vmem:[#allocation2 + $0x48] sm:$0xf0] }
 0x179   : > { %2560 = vmatmul.msk.bf16.vlgmr.msrb.gmra.mxu3 %vm1513_vm3, %v1567_v12  ;;  %2567 = vmatmul.msk.bf16.gmra.mxu0 %vm1513_vm3, %v1627_v4  ;;  %v1226_v4 = vrot.slane %v1124_v29, 4  ;;  %v1231_v29 = vshll.u32 %v1210_v63, 16  ;;  %v3905_v25 = vrot.slane %v1307_v2, 11  ;;  %v1561_v15 = vunpack.c.l.b16 %v940_v53 }
 0x17a   : > { %2592 = vmatmul.msk.bf16.gmra.mxu2 %vm1513_vm3, %v2582_v54  ;;  %2573 = vmatmul.msk.bf16.gmra.mxu1 %vm1513_vm3, %v1694_v47  ;;  %v1225_v50 = vsel %vm3706_vm9, %v1220_v31, %v1224_v18  ;;  %v1562_v37 = vunpack.c.l.b16 %v953_v22  ;;  %v1088_v0 = vsel %vm3706_vm9, %v1083_v40, %v1087_v41  ;;  %v2519_v12 = vrot.slane %v955_v48, 11  ;;  %v3916_v47 = vld [vmem:[#allocation2 + $0x28] sm:$0xf]  ;;  %v2585_v40 = vld [vmem:[#allocation2 + $0x40] sm:$0xf] }
 0x17b   : > { %v1228_v14 = vor.u32 %v1227_v35, %v1226_v4  ;;  %v1233_v21 = vrot.slane %v1231_v29, 5  ;;  %v2609_v54 = vor.u32 %v2685_v38, %v2608_v33  ;;  %v962_v2 = vrot.slane %v960_v57, 7  ;;  %v1292_v35 = vld [vmem:[#allocation2 + $0x24] sm:$0x8]  ;;  %v1212_v41 = vld [vmem:[#allocation2 + $0x38] sm:$0x1] }
 0x17c   : > { %v2520_v24 = vrot.slane %v968_v43, 11  ;;  %v1079_v10 = vsel %vm3706_vm9, %v1074_v9, %v1078_v20  ;;  %v3922_v32 = vunpack.c.l.b16 %v1225_v50  ;;  %v1235_v11 = vrot.slane %v1137_v6, 4 }
 0x17d   : > { %v1229_v46 = vrot.slane %v1228_v14, 4  ;;  %v1624_v23 = vunpack.c.l.b16 %v1088_v0  ;;  %v978_v57 = vor.u32 %v976_v59, %v975_v8  ;;  %v1314_v63 = vrot.slane %v1312_v5, 7 }
 0x17e   : > { %v1236_v26 = vrot.slane %v1140_v42, 5  ;;  %v1568_v4 = vpack.c.b16 %v1562_v37, %v1561_v15  ;;  %v1325_v48 = vshrl.u32 %v3916_v47, 16  ;;  %v1240_v56 = vshll.u32 %v1211_v55, 16 }
 0x17f   : > { %v1234_v58 = vsel %vm3706_vm9, %v1229_v46, %v1233_v21  ;;  %v1623_v6 = vunpack.c.l.b16 %v1079_v10  ;;  %v965_v36 = vor.u32 %v963_v7, %v962_v2  ;;  %v1315_v59 = vshll.u32 %v3899_v60, 16 }
 0x180   : > { %v3924_v49 = vunpack.c.l.b16 %v1234_v58  ;;  %v1237_v18 = vor.u32 %v1236_v26, %v1235_v11  ;;  %v2586_v14 = vor.u32 %v2683_v17, %v2585_v40  ;;  %v1242_v62 = vrot.slane %v1240_v56, 5  ;;  %v2686_v11 = vld [vmem:[#allocation2 + $0x3c] sm:$0xf0]  ;;  %v3972_v17 = vld [vmem:[#allocation2 + $0x34] sm:$0xf] }
 0x181   : > { %v1244_v42 = vrot.slane %v1150_v52, 4  ;;  %v1245_v53 = vrot.slane %v1153_v61, 5  ;;  %v1628_v22 = vpack.c.b16 %v1624_v23, %v1623_v6  ;;  %v979_v31 = vsel %vm3666_vm6, %v2520_v24, %v978_v57  ;;  %v897_v61 = vld [vmem:[#allocation2 + $0x54] sm:$0x8]  ;;  %v1294_v23 = vld [vmem:[#allocation2 + $0x30] sm:$0x8] }
 0x182   : > { %v1831_v43 = vpack.c.b16 %v3924_v49, %v3922_v32  ;;  %v1317_v34 = vor.u32 %v1315_v59, %v1314_v63  ;;  %v1238_v7 = vrot.slane %v1237_v18, 4  ;;  %v1320_v29 = vshrl.u32 %v1292_v35, 16  ;;  %v3974_v57 = vld [vmem:[#allocation2 + $0x40] sm:$0xf]  ;;  %v2612_v56 = vld [vmem:[#allocation2 + $0x34] sm:$0xf] }
 0x183   : > { %v1327_v9 = vrot.slane %v1325_v48, 7  ;;  %v1246_v20 = vor.u32 %v1245_v53, %v1244_v42  ;;  %v1249_v38 = vshll.u32 %v1212_v41, 16  ;;  %v1328_v52 = vshll.u32 %v3916_v47, 16  ;;  %v1296_v41 = vld [vmem:[#allocation2 + $0x3c] sm:$0x8] }
 0x184   : > { %v1243_v46 = vsel %vm3706_vm9, %v1238_v7, %v1242_v62  ;;  %v966_v21 = vsel %vm3666_vm6, %v2519_v12, %v965_v36  ;;  %v1564_v15 = vunpack.c.l.b16 %v979_v31  ;;  %v1318_v37 = vsel %vm3666_vm6, %v3905_v25, %v1317_v34  ;;  %v1213_v18 = vld [vmem:[#allocation2 + $0x44] sm:$0x1] }
 0x185   : > { %v1247_v8 = vrot.slane %v1246_v20, 4  ;;  %v1251_v50 = vrot.slane %v1249_v38, 5  ;;  %v2532_v0 = vrot.slane %v1320_v29, 11  ;;  %v1330_v33 = vor.u32 %v1328_v52, %v1327_v9  ;;  %v1411_v38 = vld [vmem:[#allocation2 + $0x2c] sm:$0x1] }
 0x186   : > { %v981_v2 = vshrl.u32 %v895_v45, 16  ;;  %v988_v24 = vrot.slane %v986_v13, 7  ;;  %v994_v58 = vshrl.u32 %v897_v61, 16  ;;  %v3966_v55 = vunpack.c.l.b16 %v1243_v46  ;;  %v2684_v13 = vld [vmem:[#allocation2 + $0x60] sm:$0xf0] }
 0x187   : > { %v1563_v12 = vunpack.c.l.b16 %v966_v21  ;;  %v1001_v25 = vrot.slane %v999_v27, 7  ;;  %v1889_v35 = vunpack.c.l.b16 %v1318_v37  ;;  %v2613_v6 = vor.u32 %v2686_v11, %v2612_v56 }
 0x188   : > { %v3980_v40 = vrot.slane %v981_v2, 11  ;;  %v3984_v27 = vor.u32 %v989_v16, %v988_v24  ;;  %v3986_v36 = vrot.slane %v994_v58, 11  ;;  %v1333_v62 = vshrl.u32 %v1294_v23, 16  ;;  %v1214_v16 = vld [vmem:[#allocation2 + $0x50] sm:$0x1] }
 0x189   : > { %2561 = vmatmul.msk.bf16.gmra.mxu3 %vm1513_vm3, %v1568_v4  ;;  %2568 = vmatmul.msk.bf16.gmra.mxu0 %vm1513_vm3, %v1628_v22  ;;  %v1569_v26 = vpack.c.b16 %v1564_v15, %v1563_v12  ;;  %v1331_v4 = vsel %vm3666_vm6, %v2532_v0, %v1330_v33  ;;  %v1338_v42 = vshrl.u32 %v3972_v17, 16  ;;  %v1351_v53 = vshrl.u32 %v3974_v57, 16  ;;  %v1410_v2 = vld [vmem:[#allocation2 + $0x20] sm:$0x1] }
 0x18a   : > { %2593 = vmatmul.msk.bf16.gmra.mxu2 %vm1513_vm3, %v2586_v14  ;;  %2622 = vmatmul.msk.bf16.vlgmr.msrb.gmra.mxu1 %vm1513_vm3, %v2609_v54  ;;  %v1252_v54 = vsel %vm3706_vm9, %v1247_v8, %v1251_v50  ;;  %v2589_v14 = vld [vmem:[#allocation2 + $0x58] sm:$0xf]  ;;  %v4391_v22 = vshrl.u32 %v3753_v44, 16  ;;  %v1890_v7 = vunpack.c.l.b16 %v1331_v4  ;;  %v4392_v29 = vshll.u32 %v3838_v1, 16 }
 0x18b   : > { %v3968_v10 = vunpack.c.l.b16 %v1252_v54  ;;  %v2590_v34 = vor.u32 %v2684_v13, %v2589_v14  ;;  %v4393_v9 = vshll.u32 %v3753_v44, 16  ;;  %v1427_v45 = vrot.slane %v1325_v48, 4  ;;  %v1215_v13 = vld [vmem:[#allocation2 + $0x5c] sm:$0x1] }
 0x18c   : > { %v1253_v31 = vrot.slane %v4391_v22, 4  ;;  %v3994_v19 = vor.u32 %v4392_v29, %v1001_v25  ;;  %v1428_v61 = vrot.slane %v1328_v52, 5  ;;  %v1258_v46 = vshll.u32 %v1213_v18, 16 }
 0x18d   : > { %v1832_v63 = vpack.c.b16 %v3968_v10, %v3966_v55  ;;  %v1254_v20 = vrot.slane %v4393_v9, 5  ;;  %v4394_v8 = vshrl.u32 %v3785_v39, 16  ;;  %v1346_v21 = vshrl.u32 %v1296_v41, 16 }
 0x18e   : > { %v1418_v15 = vrot.slane %v1312_v5, 4  ;;  %v4395_v37 = vshll.u32 %v3785_v39, 16  ;;  %v1353_v44 = vrot.slane %v1351_v53, 7  ;;  %v1419_v47 = vrot.slane %v1315_v59, 5 }
 0x18f   : > { %v1262_v50 = vrot.slane %v4394_v8, 4  ;;  %v1255_v1 = vor.u32 %v1254_v20, %v1253_v31  ;;  %v1260_v48 = vrot.slane %v1258_v46, 5  ;;  %v1267_v52 = vshll.u32 %v1214_v16, 16 }
 0x190   : > { %v1263_v0 = vrot.slane %v4395_v37, 5  ;;  %v1897_v33 = vpack.c.b16 %v1890_v7, %v1889_v35  ;;  %v1432_v54 = vshll.u32 %v1411_v38, 16  ;;  %v2533_v12 = vrot.slane %v1333_v62, 11 }
 0x191   : > { %v1256_v24 = vrot.slane %v1255_v1, 4  ;;  %v1354_v5 = vshll.u32 %v3974_v57, 16  ;;  %v1429_v11 = vor.u32 %v1428_v61, %v1427_v45  ;;  %v1269_v23 = vrot.slane %v1267_v52, 5 }
 0x192   : > { %v1264_v58 = vor.u32 %v1263_v0, %v1262_v50  ;;  %v1340_v39 = vrot.slane %v1338_v42, 7  ;;  %v1341_v60 = vshll.u32 %v3972_v17, 16  ;;  %v2534_v4 = vrot.slane %v1346_v21, 11 }
 0x193   : > { %v1261_v59 = vsel %vm3706_vm9, %v1256_v24, %v1260_v48  ;;  %v1356_v35 = vor.u32 %v1354_v5, %v1353_v44  ;;  %v1420_v56 = vor.u32 %v1419_v47, %v1418_v15  ;;  %v1434_v41 = vrot.slane %v1432_v54, 5  ;;  %v4044_v47 = vld [vmem:[#allocation2 + $0x58] sm:$0xf] }
 0x194   : > { %v1265_v25 = vrot.slane %v1264_v58, 4  ;;  %v4396_v14 = vshrl.u32 %v3822_v51, 16  ;;  %v4397_v22 = vshll.u32 %v3822_v51, 16  ;;  %v1430_v7 = vrot.slane %v1429_v11, 4  ;;  %v4056_v11 = vld [vmem:[#allocation2 + $0x4c] sm:$0xf] }
 0x195   : > { %v4026_v29 = vunpack.c.l.b16 %v1261_v59  ;;  %v1276_v16 = vshll.u32 %v1215_v13, 16  ;;  %v1343_v9 = vor.u32 %v1341_v60, %v1340_v39  ;;  %v4398_v38 = vshrl.u32 %v3842_v3, 16  ;;  %v2687_v59 = vld [vmem:[#allocation2 + $0x54] sm:$0xf0] }
 0x196   : > { %v1270_v18 = vsel %vm3706_vm9, %v1265_v25, %v1269_v23  ;;  %v1271_v62 = vrot.slane %v4396_v14, 4  ;;  %v1272_v31 = vrot.slane %v4397_v22, 5  ;;  %v4399_v61 = vshll.u32 %v3842_v3, 16 }
 0x197   : > { %v1280_v45 = vrot.slane %v4398_v38, 4  ;;  %v1421_v8 = vrot.slane %v1420_v56, 4  ;;  %v1278_v21 = vrot.slane %v1276_v16, 5  ;;  %v1005_v15 = vsel %vm3666_vm6, %v3986_v36, %v3994_v19  ;;  %v2616_v56 = vld [vmem:[#allocation2 + $0x4c] sm:$0xf] }
 0x198   : > { %v1273_v20 = vor.u32 %v1272_v31, %v1271_v62  ;;  %v1281_v46 = vrot.slane %v4399_v61, 5  ;;  %v1357_v44 = vsel %vm3666_vm6, %v2534_v4, %v1356_v35  ;;  %v1435_v3 = vsel %vm3706_vm9, %v1430_v7, %v1434_v41  ;;  %v1413_v41 = vld [vmem:[#allocation2 + $0x44] sm:$0x1] }
 0x199   : > { %2562 = vmatmul.msk.bf16.gmra.mxu3 %vm1513_vm3, %v1569_v26  ;;  %2601 = vmatmul.msk.bf16.vlgmr.msrb.gmra.mxu0 %vm1513_vm3, %v1897_v33  ;;  %v1423_v26 = vshll.u32 %v1410_v2, 16  ;;  %v992_v36 = vsel %vm3666_vm6, %v3980_v40, %v3984_v27  ;;  %v1566_v19 = vunpack.c.l.b16 %v1005_v15  ;;  %v1344_v2 = vsel %vm3666_vm6, %v2533_v12, %v1343_v9 }
 0x19a   : > { %2594 = vmatmul.msk.bf16.gmra.mxu2 %vm1513_vm3, %v2590_v34  ;;  %2623 = vmatmul.msk.bf16.gmra.mxu1 %vm1513_vm3, %v2613_v6  ;;  %v4028_v34 = vunpack.c.l.b16 %v1270_v18  ;;  %v1216_v6 = vld [vmem:[#allocation2 + $0x68] sm:$0x1]  ;;  %v1274_v1 = vrot.slane %v1273_v20, 4  ;;  %v1282_v37 = vor.u32 %v1281_v46, %v1280_v45  ;;  %v1892_v24 = vunpack.c.l.b16 %v1357_v44 }
 0x19b   : > { %v1425_v50 = vrot.slane %v1423_v26, 5  ;;  %v1285_v0 = vshll.u32 %v1216_v6, 16  ;;  %v2030_v58 = vunpack.c.l.b16 %v1435_v3  ;;  %v1445_v23 = vrot.slane %v1351_v53, 4  ;;  %v1300_v26 = vld [vmem:[#allocation2 + $0x54] sm:$0x8] }
 0x19c   : > { %v1833_v51 = vpack.c.b16 %v4028_v34, %v4026_v29  ;;  %v1279_v48 = vsel %vm3706_vm9, %v1274_v1, %v1278_v21  ;;  %v1283_v52 = vrot.slane %v1282_v37, 4  ;;  %v1377_v40 = vshrl.u32 %v4044_v47, 16  ;;  %v1412_v53 = vld [vmem:[#allocation2 + $0x38] sm:$0x1]  ;;  %v1298_v6 = vld [vmem:[#allocation2 + $0x48] sm:$0x8] }
 0x19d   : > { %v1287_v33 = vrot.slane %v1285_v0, 5  ;;  %v1426_v54 = vsel %vm3706_vm9, %v1421_v8, %v1425_v50  ;;  %v1446_v27 = vrot.slane %v1354_v5, 5  ;;  %v4063_v25 = vunpack.c.l.b16 %v1279_v48  ;;  %v2117_v29 = vld [vmem:[%s4400_s3] sm:$0xf]  ;;  %s2215_s3 = sshll.u32 %s2212_s2, 4  ;;  %s2216_s3 = int_to_ptr.hbm [resolvable:$true] %s2215_s3 }
 0x19e   : > { %v1565_v13 = vunpack.c.l.b16 %v992_v36  ;;  %v1891_v4 = vunpack.c.l.b16 %v1344_v2  ;;  %v2029_v35 = vunpack.c.l.b16 %v1426_v54  ;;  %v1364_v57 = vshrl.u32 %v4056_v11, 16  ;;  %v2620_v54 = vld [vmem:[#allocation2 + $0x64] sm:$0xf]  ;;  %s2965_s17 = sshra.s32 %s2216_s3, 4  ;;  %s2966_s17 = int_to_ptr.hbm [resolvable:$true] %s2965_s17 }
 0x19f   : > { %v1288_v39 = vsel %vm3706_vm9, %v1283_v52, %v1287_v33  ;;  %v1436_v18 = vrot.slane %v1338_v42, 4  ;;  %v1437_v14 = vrot.slane %v1341_v60, 5  ;;  %v2617_v7 = vor.u32 %v2687_v59, %v2616_v56  ;;  %v1303_v52 = vld [vmem:[#allocation2 + $0x64] sm:$0xf]  ;;  %v1305_v33 = vld [vmem:[#allocation2 + $0x70] sm:$0xf]  ;;  %p2972_p12 = scmp.lt.s32.totalorder %s2966_s17, %s4405_s29 }
 0x1a0   : > { %v4065_v12 = vunpack.c.l.b16 %v1288_v39  ;;  %v1570_v62 = vpack.c.b16 %v1566_v19, %v1565_v13  ;;  %v1898_v22 = vpack.c.b16 %v1892_v24, %v1891_v4  ;;  %v2037_v31 = vpack.c.b16 %v2030_v58, %v2029_v35  ;;  %v2688_v24 = vld [vmem:[#allocation2 + $0x6c] sm:$0xf0]  ;;  %v1302_v59 = vld [vmem:[#allocation2 + $0x60] sm:$0x8]  ;;  %v1415_v35 = vld [vmem:[#allocation2 + $0x5c] sm:$0x1] }
 0x1a1   : > { %v1372_v16 = vshrl.u32 %v1300_v26, 16  ;;  %v1379_v9 = vrot.slane %v1377_v40, 7  ;;  %v1447_v20 = vor.u32 %v1446_v27, %v1445_v23  ;;  %v1450_v38 = vshll.u32 %v1413_v41, 16  ;;  %v1304_v27 = vld [vmem:[#allocation2 + $0x6c] sm:$0x8] }
 0x1a2   : > { %v1834_v5 = vpack.c.b16 %v4065_v12, %v4063_v25  ;;  %v1441_v45 = vshll.u32 %v1412_v53, 16  ;;  %v1359_v17 = vshrl.u32 %v1298_v6, 16  ;;  %v1366_v42 = vrot.slane %v1364_v57, 7  ;;  %v1414_v6 = vld [vmem:[#allocation2 + $0x50] sm:$0x1] }
 0x1a3   : > { %v1380_v60 = vshll.u32 %v4044_v47, 16  ;;  %v1438_v61 = vor.u32 %v1437_v14, %v1436_v18  ;;  %v1367_v46 = vshll.u32 %v4056_v11, 16  ;;  %v2536_v8 = vrot.slane %v1372_v16, 11 }
 0x1a4   : > { %v1448_v21 = vrot.slane %v1447_v20, 4  ;;  %v1452_v15 = vrot.slane %v1450_v38, 5  ;;  %v2535_v1 = vrot.slane %v1359_v17, 11  ;;  %v1443_v44 = vrot.slane %v1441_v45, 5 }
 0x1a5   : > { %v1382_v50 = vor.u32 %v1380_v60, %v1379_v9  ;;  %v1369_v37 = vor.u32 %v1367_v46, %v1366_v42  ;;  %v1439_v0 = vrot.slane %v1438_v61, 4  ;;  %v1390_v58 = vshrl.u32 %v1303_v52, 16 }
 0x1a6   : > { %v1453_v48 = vsel %vm3706_vm9, %v1448_v21, %v1452_v15  ;;  %v1403_v11 = vshrl.u32 %v1305_v33, 16  ;;  %v1463_v13 = vrot.slane %v1377_v40, 4  ;;  %v1464_v4 = vrot.slane %v1380_v60, 5 }
 0x1a7   : > { %v1383_v3 = vsel %vm3666_vm6, %v2536_v8, %v1382_v50  ;;  %v1370_v47 = vsel %vm3666_vm6, %v2535_v1, %v1369_v37  ;;  %v1444_v36 = vsel %vm3706_vm9, %v1439_v0, %v1443_v44  ;;  %v2032_v2 = vunpack.c.l.b16 %v1453_v48 }
 0x1a8   : > { %v1894_v19 = vunpack.c.l.b16 %v1383_v3  ;;  %v1893_v23 = vunpack.c.l.b16 %v1370_v47  ;;  %v2031_v39 = vunpack.c.l.b16 %v1444_v36  ;;  %v1454_v56 = vrot.slane %v1364_v57, 4  ;;  %v1416_v47 = vld [vmem:[#allocation2 + $0x68] sm:$0x1]  ;;  %v1417_v36 = vld [vmem:[#allocation2 + $0x74] sm:$0x1] }
 0x1a9   : > { %2563 = vmatmul.msk.bf16.gmra.mxu3 %vm1513_vm3, %v1570_v62  ;;  %2602 = vmatmul.msk.bf16.gmra.mxu0 %vm1513_vm3, %v1898_v22  ;;  %v2621_v53 = vor.u32 %v2688_v24, %v2620_v54  ;;  %v1455_v18 = vrot.slane %v1367_v46, 5  ;;  %v1385_v62 = vshrl.u32 %v1302_v59, 16  ;;  %v1392_v22 = vrot.slane %v1390_v58, 7 }
 0x1aa   : > { %2627 = vmatmul.msk.bf16.vlgmr.msrb.gmra.mxu2 %vm1513_vm3, %v2037_v31  ;;  %2624 = vmatmul.msk.bf16.gmra.mxu1 %vm1513_vm3, %v2617_v7  ;;  %v1899_v26 = vpack.c.b16 %v1894_v19, %v1893_v23  ;;  %v2038_v41 = vpack.c.b16 %v2032_v2, %v2031_v39  ;;  %v1398_v31 = vshrl.u32 %v1304_v27, 16  ;;  %v1405_v7 = vrot.slane %v1403_v11, 7 }
 0x1ab   : > { %v1465_v40 = vor.u32 %v1464_v4, %v1463_v13  ;;  %v1468_v57 = vshll.u32 %v1415_v35, 16  ;;  %v1393_v16 = vshll.u32 %v1303_v52, 16  ;;  %v1406_v9 = vshll.u32 %v1305_v33, 16 }
 0x1ac   : > { %v1456_v20 = vor.u32 %v1455_v18, %v1454_v56  ;;  %v1459_v38 = vshll.u32 %v1414_v6, 16  ;;  %v2537_v45 = vrot.slane %v1385_v62, 11  ;;  %v2538_v42 = vrot.slane %v1398_v31, 11 }
 0x1ad   : > { %v1395_v17 = vor.u32 %v1393_v16, %v1392_v22  ;;  %v1408_v60 = vor.u32 %v1406_v9, %v1405_v7  ;;  %v1466_v61 = vrot.slane %v1465_v40, 4  ;;  %v1470_v32 = vrot.slane %v1468_v57, 5 }
 0x1ae   : > { %v1457_v49 = vrot.slane %v1456_v20, 4  ;;  %v1472_v44 = vrot.slane %v1390_v58, 4  ;;  %v1473_v3 = vrot.slane %v1393_v16, 5  ;;  %v1481_v48 = vrot.slane %v1403_v11, 4 }
 0x1af   : > { %v1396_v46 = vsel %vm3666_vm6, %v2537_v45, %v1395_v17  ;;  %v1409_v8 = vsel %vm3666_vm6, %v2538_v42, %v1408_v60  ;;  %v1471_v50 = vsel %vm3706_vm9, %v1466_v61, %v1470_v32  ;;  %v1482_v52 = vrot.slane %v1406_v9, 5 }
 0x1b0   : > { %v1895_v15 = vunpack.c.l.b16 %v1396_v46  ;;  %v1896_v1 = vunpack.c.l.b16 %v1409_v8  ;;  %v2034_v0 = vunpack.c.l.b16 %v1471_v50  ;;  %v1474_v2 = vor.u32 %v1473_v3, %v1472_v44 }
 0x1b1   : > { %v1477_v54 = vshll.u32 %v1416_v47, 16  ;;  %v1483_v24 = vor.u32 %v1482_v52, %v1481_v48  ;;  %v1486_v23 = vshll.u32 %v1417_v36, 16  ;;  %v2143_v34 = vsel %vm1526_vm2, %v2117_v29, 0 }
 0x1b2   : > { %v1900_v30 = vpack.c.b16 %v1896_v1, %v1895_v15  ;;  %v1475_v11 = vrot.slane %v1474_v2, 4  ;;  %2152 = vmatpush.bf16.msrb.mxu3 %v2143_v34 }
 0x1b3   : > { %v1479_v39 = vrot.slane %v1477_v54, 5  ;;  %v1484_v59 = vrot.slane %v1483_v24, 4  ;;  %v1488_v27 = vrot.slane %v1486_v23, 5 }
 0x1b5   : > { %v1480_v13 = vsel %vm3706_vm9, %v1475_v11, %v1479_v39  ;;  %v1489_v55 = vsel %vm3706_vm9, %v1484_v59, %v1488_v27 }
 0x1b6   : > { %v4086_v14 = vpop.f32.mrf.mxu0  ;;  %v2035_v10 = vunpack.c.l.b16 %v1480_v13 }
 0x1b9   : > { %2596 = vmatmul.msk.bf16.vlgmr.msra.gmra.mxu3 %vm1513_vm3, %v1831_v43  ;;  %2603 = vmatmul.msk.bf16.gmra.mxu0 %vm1513_vm3, %v1899_v26  ;;  %v1461_v43 = vrot.slane %v1459_v38, 5 }
 0x1ba   : > { %2628 = vmatmul.msk.bf16.gmra.mxu2 %vm1513_vm3, %v2038_v41  ;;  %2625 = vmatmul.msk.bf16.gmra.mxu1 %vm1513_vm3, %v2621_v53 }
 0x1bb   : > { %v1462_v37 = vsel %vm3706_vm9, %v1457_v49, %v1461_v43 }
 0x1bc   : > { %v2033_v33 = vunpack.c.l.b16 %v1462_v37 }
 0x1be   : > { %v4101_v21 = vpop.f32.mrf.mxu0  ;;  %v2039_v19 = vpack.c.b16 %v2034_v0, %v2033_v33 }
 0x1c6   : > { %v1544_v58 = vpop.f32.mrf.mxu0 }
 0x1c7   : > { %v1719_v41 = vpop.f32.mrf.mxu1 }
 0x1c9   : > { %2597 = vmatmul.msk.bf16.gmra.mxu3 %vm1513_vm3, %v1832_v63  ;;  %2604 = vmatmul.msk.bf16.gmra.mxu0 %vm1513_vm3, %v1900_v30  ;;  %v2036_v63 = vunpack.c.l.b16 %v1489_v55 }
 0x1ca   : > { %2629 = vmatmul.msk.bf16.gmra.mxu2 %vm1513_vm3, %v2039_v19 }
 0x1cb   : > { %v2040_v35 = vpack.c.b16 %v2036_v63, %v2035_v10 }
 0x1ce   : > { %v4115_v4 = vpop.f32.mrf.mxu0 }
 0x1cf   : > { %v1721_v18 = vpop.f32.mrf.mxu1 }
 0x1d6   : > { %v1653_v26 = vpop.f32.mrf.mxu0 }
 0x1d7   : > { %v1724_v6 = vpop.f32.mrf.mxu1 }
 0x1d9   : > { %2598 = vmatmul.msk.bf16.gmra.mxu3 %vm1513_vm3, %v1833_v51 }
 0x1da   : > { %2630 = vmatmul.msk.bf16.gmra.mxu2 %vm1513_vm3, %v2040_v35 }
 0x1dc   : > { %v1549_v56 = vpop.f32.mrf.mxu2 }
 0x1de   : > { %v1655_v28 = vpop.f32.mrf.mxu0 }
 0x1df   : > { %v4135_v16 = vpop.f32.mrf.mxu1 }
 0x1e4   : > { %v4122_v53 = vpop.f32.mrf.mxu2 }
 0x1e6   : > { %v1658_v51 = vpop.f32.mrf.mxu0 }
 0x1e7   : > { %v1729_v45 = vpop.f32.mrf.mxu1 }
 0x1e9   : > { %2599 = vmatmul.msk.bf16.gmra.mxu3 %vm1513_vm3, %v1834_v5 }
 0x1ec   : > { %v1554_v62 = vpop.f32.mrf.mxu3 }
 0x1ed   : > { %v1793_v22 = vpop.f32.mrf.mxu2 }
 0x1ee   : > { %v1660_v5 = vpop.f32.mrf.mxu0 }
 0x1ef   : > { %v4141_v49 = vpop.f32.mrf.mxu1 }
 0x1f4   : > { %v4132_v31 = vpop.f32.mrf.mxu3 }
 0x1f5   : > { %v1795_v7 = vpop.f32.mrf.mxu2 }
 0x1f6   : > { %v1663_v38 = vpop.f32.mrf.mxu0 }
 0x1f7   : > { %v1734_v37 = vpop.f32.mrf.mxu1 }
 0x1fc   : > { %v1595_v40 = vpop.f32.mrf.mxu3 }
 0x1fd   : > { %v1596_v25 = vadd.f32 %v1595_v40, %v4086_v14  ;;  %v1798_v12 = vpop.f32.mrf.mxu2 }
 0x1fe   : > { %v4139_v32 = vpop.f32.mrf.mxu0 }
 0x1ff   : > { %v1673_v57 = vadd.f32 %v1653_v26, %v1596_v25  ;;  %v4147_v52 = vpop.f32.mrf.mxu1 }
 0x201   : > { %v1739_v46 = vadd.f32 %v1719_v41, %v1673_v57 }
 0x203   : > { %v1813_v8 = vadd.f32 %v1793_v22, %v1739_v46 }
 0x204   : > { %v1597_v9 = vpop.f32.mrf.mxu3 }
 0x205   : > { %v4137_v20 = vpop.f32.mrf.mxu2  ;;  %v1598_v11 = vadd.f32 %v1597_v9, %v4101_v21  ;;  %v4158_v21 = vld [vmem:[%s4401_s21] ss:$0 sm:$0xff]  ;;  %s2967_s21 = scalar_lea.hbm %s2966_s17, 64 }
 0x206   : > { %v1668_v50 = vpop.f32.mrf.mxu0  ;;  %p2968_p2 = scmp.ne.s32.totalorder %s2966_s17, %s2967_s21 }
 0x207   : > { %v1999_v54 = vpop.f32.mrf.mxu1  ;;  %v1674_v59 = vadd.f32 %v1655_v28, %v1598_v11 }
 0x208   : > { %p2969_p4 = pnand %p2968_p2, %p3335_p6 }
 0x209   : > { %v1740_v26 = vadd.f32 %v1721_v18, %v1674_v59 }
 0x20a   : > { %p2970_p5 = pneg %p2969_p4 }
 0x20c   : > { %v1600_v17 = vpop.f32.mrf.mxu3 }
 0x20d   : > { %v1601_v42 = vadd.f32 %v1600_v17, %v1544_v58  ;;  %v1803_v60 = vpop.f32.mrf.mxu2 }
 0x20e   : > { %v4145_v48 = vpop.f32.mrf.mxu0 }
 0x20f   : > { %v1675_v61 = vadd.f32 %v1658_v51, %v1601_v42  ;;  %v2001_v13 = vpop.f32.mrf.mxu1 }
 0x211   : > { %v1741_v2 = vadd.f32 %v1724_v6, %v1675_v61 }
 0x213   : > { %v1815_v24 = vadd.f32 %v1798_v12, %v1741_v2 }
 0x214   : > { %v1602_v43 = vpop.f32.mrf.mxu3 }
 0x215   : > { %v4143_v14 = vpop.f32.mrf.mxu2  ;;  %v1603_v6 = vadd.f32 %v1602_v43, %v4115_v4 }
 0x216   : > { %v1925_v19 = vpop.f32.mrf.mxu0 }
 0x217   : > { %v2004_v51 = vpop.f32.mrf.mxu1  ;;  %v1676_v57 = vadd.f32 %v1660_v5, %v1603_v6 }
 0x219   : > { %v1742_v46 = vadd.f32 %v4135_v16, %v1676_v57 }
 0x21b   : > { %v1816_v5 = vadd.f32 %v4137_v20, %v1742_v46 }
 0x21c   : > { %v1605_v15 = vpop.f32.mrf.mxu3 }
 0x21d   : > { %v1606_v1 = vadd.f32 %v1605_v15, %v1549_v56  ;;  %v1808_v44 = vpop.f32.mrf.mxu2 }
 0x21e   : > { %v1927_v39 = vpop.f32.mrf.mxu0 }
 0x21f   : > { %v1677_v0 = vadd.f32 %v1663_v38, %v1606_v1 }
 0x221   : > { %v1743_v27 = vadd.f32 %v1729_v45, %v1677_v0 }
 0x223   : > { %v1817_v63 = vadd.f32 %v1803_v60, %v1743_v27 }
 0x224   : > { %v1607_v3 = vpop.f32.mrf.mxu3 }
 0x225   : > { %v4149_v33 = vpop.f32.mrf.mxu2 }
 0x226   : > { %v1930_v22 = vpop.f32.mrf.mxu0 }
 0x22c   : > { %v1610_v47 = vpop.f32.mrf.mxu3 }
 0x22d   : > { %v1611_v36 = vadd.f32 %v1610_v47, %v1554_v62  ;;  %v2065_v23 = vpop.f32.mrf.mxu2  ;;  %v1814_v62 = vadd.f32 %v1795_v7, %v1740_v26  ;;  %v1608_v47 = vadd.f32 %v1607_v3, %v4122_v53 }
 0x22e   : > { %v1932_v4 = vpop.f32.mrf.mxu0 }
 0x22f   : > { %v1679_v30 = vadd.f32 %v1668_v50, %v1611_v36 }
 0x231   : > { %v1745_v7 = vadd.f32 %v1734_v37, %v1679_v30 }
 0x233   : > { %v1819_v42 = vadd.f32 %v1808_v44, %v1745_v7 }
 0x234   : > { %v4151_v58 = vpop.f32.mrf.mxu3 }
 0x235   : > { %v2067_v35 = vpop.f32.mrf.mxu2 }
 0x236   : > { %v1935_v30 = vpop.f32.mrf.mxu0 }
 0x23c   : > { %v1859_v55 = vpop.f32.mrf.mxu3 }
 0x23d   : > { %v1879_v10 = vadd.f32 %v1859_v55, %v1813_v8  ;;  %v2070_v25 = vpop.f32.mrf.mxu2  ;;  %v2006_v8 = vpop.f32.mrf.mxu1 }
 0x23e   : > { %v1937_v55 = vpop.f32.mrf.mxu0 }
 0x23f   : > { %v1945_v56 = vadd.f32 %v1925_v19, %v1879_v10 }
 0x241   : > { %v2019_v41 = vadd.f32 %v1999_v54, %v1945_v56  ;;  %v1678_v54 = vadd.f32 %v4139_v32, %v1608_v47 }
 0x243   : > { %v2085_v40 = vadd.f32 %v2065_v23, %v2019_v41  ;;  %v1744_v53 = vadd.f32 %v4141_v49, %v1678_v54  ;;  %v519_v54 = vld [vmem:[%s3464_s30 + $0x8] sm:$0xff]  }
 0x244   : > { %v1861_v29 = vpop.f32.mrf.mxu3 }
 0x245   : > { %v1880_v34 = vadd.f32 %v1861_v29, %v1814_v62  ;;  %v2097_v18 = vadd.f32 %v4158_v21, %v2085_v40  ;;  %v2072_v15 = vpop.f32.mrf.mxu2  ;;  %v2009_v2 = vpop.f32.mrf.mxu1  ;;  %v1818_v32 = vadd.f32 %v4143_v14, %v1744_v53 }
 0x246   : > { %v1940_v6 = vpop.f32.mrf.mxu0 }
 0x247   : > { %v1946_v28 = vadd.f32 %v1927_v39, %v1880_v34  ;;  %v2105_v60 = vmax.f32 %v2097_v18, 0.0 }
 0x249   : > { %v2020_v12 = vadd.f32 %v2001_v13, %v1946_v28 }
 0x24b   : > { %v2086_v9 = vadd.f32 %v2067_v35, %v2020_v12 }
 0x24c   : > { %v1864_v38 = vpop.f32.mrf.mxu3 }
 0x24d   : > { %v2098_v45 = vadd.f32 %v4158_v21, %v2086_v9  ;;  %v1881_v17 = vadd.f32 %v1864_v38, %v1815_v24  ;;  %v2075_v23 = vpop.f32.mrf.mxu2  ;;  %v2011_v35 = vpop.f32.mrf.mxu1 }
 0x24f   : > { %v2106_v61 = vmax.f32 %v2098_v45, 0.0  ;;  %v1947_v43 = vadd.f32 %v1930_v22, %v1881_v17  ;;  %v1942_v17 = vpop.f32.mrf.mxu0 }
 0x251   : > { %v2113_v50 = vpack.c.bf16 %v2106_v61, %v2105_v60  ;;  %v2021_v1 = vadd.f32 %v2004_v51, %v1947_v43 }
 0x253   : > { %2631 = vmatmul.msk.bf16.vlgmr.msrb.gmra.mxu3 %vm1513_vm3, %v2113_v50  ;;  %v2087_v36 = vadd.f32 %v2070_v25, %v2021_v1 }
 0x254   : > { %v1866_v37 = vpop.f32.mrf.mxu3 }
 0x255   : > { %v1882_v0 = vadd.f32 %v1866_v37, %v1816_v5  ;;  %v2099_v24 = vadd.f32 %v4158_v21, %v2087_v36  ;;  %v2077_v41 = vpop.f32.mrf.mxu2  ;;  %v2014_v25 = vpop.f32.mrf.mxu1  ;;  %v2860_v5 = vld [vmem:[%s4402_s4] ss:$0 sm:$0xff]  ;;  %s2971_s4 = scalar_lea.hbm %s4405_s29, 512 }
 0x256   : > { %p2973_p9 = scmp.lt.s32.totalorder %s2971_s4, %s2967_s21 }
 0x257   : > { %v1948_v44 = vadd.f32 %v1932_v4, %v1882_v0  ;;  %v2107_v27 = vmax.f32 %v2099_v24, 0.0  ;;  %v2120_v24 = vunpack.c.l.bf16 %v519_v54 }
 0x258   : > { %p2974_p0 = por %p2973_p9, %p2972_p12 }
 0x259   : > { %v2022_v19 = vadd.f32 %v2006_v8, %v1948_v44 }
 0x25a   : > { %p2975_p11 = pnand %p2974_p0, %p2970_p5 }
 0x25b   : > { %v2088_v16 = vadd.f32 %v2072_v15, %v2022_v19 }
 0x25c   : > { %v1869_v11 = vpop.f32.mrf.mxu3 }
 0x25d   : > { %v1883_v39 = vadd.f32 %v1869_v11, %v1817_v63  ;;  %v2100_v59 = vadd.f32 %v4158_v21, %v2088_v16  ;;  %v1613_v63 = vadd.f32 %v4151_v58, %v4132_v31  ;;  %v2080_v31 = vpop.f32.mrf.mxu2  ;;  %v2016_v60 = vpop.f32.mrf.mxu1 }
 0x25f   : > { %v1949_v20 = vadd.f32 %v1935_v30, %v1883_v39  ;;  %v2108_v13 = vmax.f32 %v2100_v59, 0.0  ;;  %v1680_v34 = vadd.f32 %v4145_v48, %v1613_v63 }
 0x261   : > { %v2114_v3 = vpack.c.bf16 %v2108_v13, %v2107_v27  ;;  %v2023_v10 = vadd.f32 %v2009_v2, %v1949_v20  ;;  %v1746_v9 = vadd.f32 %v4147_v52, %v1680_v34  ;;  %v2121_v20 = vunpack.c.h.bf16 %v519_v54 }
 0x263   : > { %2632 = vmatmul.msk.bf16.gmra.mxu3 %vm1513_vm3, %v2114_v3  ;;  %v2089_v62 = vadd.f32 %v2075_v23, %v2023_v10  ;;  %v1820_v48 = vadd.f32 %v4149_v33, %v1746_v9  ;;  %v517_v33 = vld [vmem:[%s3464_s30] sm:$0xff]   ;;  %v521_v3 = vld [vmem:[%s3464_s30 + $0x10] sm:$0xff]  }
 0x264   : > { %v1871_v56 = vpop.f32.mrf.mxu3  ;;  %v2118_v37 = vunpack.c.l.bf16 %v517_v33  ;;  %v2122_v10 = vunpack.c.l.bf16 %v521_v3 }
 0x265   : > { %v1884_v26 = vadd.f32 %v1871_v56, %v1818_v32  ;;  %v2101_v51 = vadd.f32 %v4158_v21, %v2089_v62  ;;  %v2082_v43 = vpop.f32.mrf.mxu2 }
 0x267   : > { %v1950_v22 = vadd.f32 %v1937_v55, %v1884_v26  ;;  %v2109_v57 = vmax.f32 %v2101_v51, 0.0 }
 0x269   : > { %v2024_v29 = vadd.f32 %v2011_v35, %v1950_v22 }
 0x26b   : > { %v2090_v49 = vadd.f32 %v2077_v41, %v2024_v29  ;;  %v2123_v41 = vunpack.c.h.bf16 %v521_v3  ;;  %v523_v29 = vld [vmem:[%s3464_s30 + $0x18] sm:$0xff]  }
 0x26c   : > { %v1874_v40 = vpop.f32.mrf.mxu3 }
 0x26d   : > { %v1885_v28 = vadd.f32 %v1874_v40, %v1819_v42  ;;  %v2102_v14 = vadd.f32 %v4158_v21, %v2090_v49  ;;  %v2124_v49 = vunpack.c.l.bf16 %v523_v29 }
 0x26f   : > { %v1951_v12 = vadd.f32 %v1940_v6, %v1885_v28  ;;  %v2110_v18 = vmax.f32 %v2102_v14, 0.0  ;;  %v2125_v14 = vunpack.c.h.bf16 %v523_v29 }
 0x271   : > { %v2115_v58 = vpack.c.bf16 %v2110_v18, %v2109_v57  ;;  %v2025_v7 = vadd.f32 %v2014_v25, %v1951_v12 }
 0x273   : > { %2633 = vmatmul.msk.bf16.gmra.mxu3 %vm1513_vm3, %v2115_v58  ;;  %v2091_v42 = vadd.f32 %v2080_v31, %v2025_v7 }
 0x274   : > { %v1876_v38 = vpop.f32.mrf.mxu3 }
 0x275   : > { %v1886_v45 = vadd.f32 %v1876_v38, %v1820_v48  ;;  %v2103_v52 = vadd.f32 %v4158_v21, %v2091_v42 }
 0x277   : > { %v1952_v4 = vadd.f32 %v1942_v17, %v1886_v45  ;;  %v2111_v50 = vmax.f32 %v2103_v52, 0.0 }
 0x279   : > { %v2026_v61 = vadd.f32 %v2016_v60, %v1952_v4 }
 0x27b   : > { %v2092_v46 = vadd.f32 %v2082_v43, %v2026_v61 }
 0x27d   : > { %v2104_v8 = vadd.f32 %v4158_v21, %v2092_v46  ;;  %v2119_v21 = vunpack.c.h.bf16 %v517_v33 }
 0x27f   : > { %v2112_v15 = vmax.f32 %v2104_v8, 0.0 }
 0x281   : > { %v2116_v1 = vpack.c.bf16 %v2112_v15, %v2111_v50 }
 0x283   : > { %2634 = vmatmul.msk.bf16.gmra.mxu3 %vm1513_vm3, %v2116_v1 }
 0x2d6   : > { %v2154_v0 = vpop.f32.mrf.mxu3 }
 0x2d7   : > { %v2155_v47 = vadd.f32 %v2860_v5, %v2154_v0 }
 0x2d9   : > { %v2174_v36 = vadd.f32 %v2155_v47, %v2118_v37 }
 0x2db   : > { %v2182_v44 = vmax.f32 %v2174_v36, 0.0 }
 0x2dd   : > { %2190 = vst.msk [vmem:[%s4190_s22] sm:$0xff] %vm581_vm0, %v2182_v44 }
 0x2de   : > { %v2156_v30 = vpop.f32.mrf.mxu3 }
 0x2df   : > { %v2157_v19 = vadd.f32 %v2860_v5, %v2156_v30 }
 0x2e1   : > { %v2175_v2 = vadd.f32 %v2157_v19, %v2119_v21 }
 0x2e3   : > { %v2183_v16 = vmax.f32 %v2175_v2, 0.0 }
 0x2e5   : > { %2191 = vst.msk [vmem:[%s4190_s22 + $0x8] sm:$0xff] %vm581_vm0, %v2183_v16 }
 0x2e6   : > { %v2159_v23 = vpop.f32.mrf.mxu3 }
 0x2e7   : > { %v2160_v11 = vadd.f32 %v2860_v5, %v2159_v23 }
 0x2e9   : > { %v2176_v39 = vadd.f32 %v2160_v11, %v2120_v24 }
 0x2eb   : > { %v2184_v59 = vmax.f32 %v2176_v39, 0.0 }
 0x2ed   : > { %2192 = vst.msk [vmem:[%s4190_s22 + $0x10] sm:$0xff] %vm581_vm0, %v2184_v59 }
 0x2ee   : > { %v2161_v27 = vpop.f32.mrf.mxu3 }
 0x2ef   : > { %v2162_v13 = vadd.f32 %v2860_v5, %v2161_v27 }
 0x2f1   : > { %v2177_v53 = vadd.f32 %v2162_v13, %v2121_v20 }
 0x2f3   : > { %v2185_v55 = vmax.f32 %v2177_v53, 0.0 }
 0x2f5   : > { %2193 = vst.msk [vmem:[%s4190_s22 + $0x18] sm:$0xff] %vm581_vm0, %v2185_v55 }
 0x2f6   : > { %v2164_v32 = vpop.f32.mrf.mxu3 }
 0x2f7   : > { %v2165_v35 = vadd.f32 %v2860_v5, %v2164_v32 }
 0x2f9   : > { %v2178_v56 = vadd.f32 %v2165_v35, %v2122_v10 }
 0x2fb   : > { %v2186_v26 = vmax.f32 %v2178_v56, 0.0 }
 0x2fd   : > { %2194 = vst.msk [vmem:[%s4190_s22 + $0x20] sm:$0xff] %vm581_vm0, %v2186_v26 }
 0x2fe   : > { %v2166_v63 = vpop.f32.mrf.mxu3 }
 0x2ff   : > { %v2167_v62 = vadd.f32 %v2860_v5, %v2166_v63 }
 0x301   : > { %v2179_v22 = vadd.f32 %v2167_v62, %v2123_v41 }
 0x303   : > { %v2187_v34 = vmax.f32 %v2179_v22, 0.0 }
 0x305   : > { %2195 = vst.msk [vmem:[%s4190_s22 + $0x28] sm:$0xff] %vm581_vm0, %v2187_v34 }
 0x306   : > { %v2169_v51 = vpop.f32.mrf.mxu3 }
 0x307   : > { %v2170_v6 = vadd.f32 %v2860_v5, %v2169_v51 }
 0x309   : > { %v2180_v40 = vadd.f32 %v2170_v6, %v2124_v49 }
 0x30b   : > { %v2188_v28 = vmax.f32 %v2180_v40, 0.0 }
 0x30d   : > { %2196 = vst.msk [vmem:[%s4190_s22 + $0x30] sm:$0xff] %vm581_vm0, %v2188_v28 }
 0x30e   : > { %v2171_v25 = vpop.f32.mrf.mxu3 }
 0x30f   : > { %v2172_v12 = vadd.f32 %v2860_v5, %v2171_v25 }
 0x311   : > { %v2181_v57 = vadd.f32 %v2172_v12, %v2125_v14 }
 0x313   : > { %v2189_v18 = vmax.f32 %v2181_v57, 0.0 }
 0x315   : > { %2197 = vst.msk [vmem:[%s4190_s22 + $0x38] sm:$0xff] %vm581_vm0, %v2189_v18 }
 0x316   : > { %2978 = shalt.err (!%p2975_p11)
}
 0x317   : > { %s3134_s23 = smov 128   ;;  %s3135_s22 = smov 8  }
 0x318   : > { %2699 = dma.vmem_to_hbm [thread:$0]  (%p3335_p6), %s2214_s18, 1024, %s2216_s3, %s2199_s1, %s3134_s23, %s3134_s23, %s3135_s22  }
 0x319 PF: > { %s4407_s15 = sld [smem:[#allocation14_spill]]  ;;  %p2716_p7 = scmp.ge.s32.totalorder %s3129_s25, 2 }
 0x31b   : > { %p2712_p13 = pnand %p2716_p7, %p3340_p8 }
 0x31d   : > { %p2713_p10 = pneg %p2712_p13 }
 0x31f   : > { %s2230_s16 = sand.u32 1, %s4407_s15  }
 0x320   : > { %s2231_s12 = scalar_lea.sflag [#allocation5], %s2230_s16 }
 0x321   : > { %3060 = dma.done.wait (%p2713_p10), %s2231_s12, 1024  }
 0x322   : > { %3062 = vsyncadd (%p2713_p10), %s2231_s12, 4294966272  ;;  %s28_s25 = sadd.s32 1, %s3129_s25   ;;  %s4410_s11 = sld [smem:[#allocation15_spill]] }
 0x323   : > { %p4234_p1 = scmp.ge.s32.totalorder %s28_s25, 10   ;;  %s4411_s24 = sld [smem:[#allocation26_spill]] }
 0x324   : > { %s4412_s15 = sld [smem:[#allocation16_spill]]  ;;  %s4421_s30 = smov %s3069_s10 }
 0x325   : > { %s4413_s16 = sld [smem:[#allocation17_spill]]  ;;  %s4424_s12 = smov %s3081_s13 }
 0x326   : > { %s4414_s17 = sld [smem:[#allocation27_spill]]  ;;  %s4425_s13 = smov %s3085_s14 }
 0x327   : > { %s4415_s2 = sld [smem:[#allocation18_spill]]  ;;  %s4426_s14 = smov %s3428_s6 }
 0x328   : > { %s4416_s20 = sld [smem:[#allocation30_spill]]  ;;  %s4422_s10 = smov %s4410_s11 }
 0x329   : > { %s4417_s21 = sld [smem:[#allocation21_spill]]  ;;  %s4423_s11 = smov %s4411_s24 }
 0x32a   : > { %s4418_s22 = sld [smem:[#allocation22_spill]]  ;;  %s4427_s18 = smov %s3105_s19 }
 0x32b   : > { %s4419_s23 = sld [smem:[#allocation23_spill]] }
 0x32c   : > { %s4420_s3 = sld [smem:[#allocation24_spill]] }
 0x32d   : > { %s4428_s19 = smov %s4415_s2 }
 0x32e   :  { %27 = sbr.rel (!%p4234_p1) target bundleno = 25 (0x19), region = 137 }
 0x332   : > { %s4429_s24 = smov %s4420_s3 }
 0x333   :  { %2237 = vsyncpa [#allocation4], 1 }
 0x334   :  { %2239 = vsyncpa [#allocation4 + $0x1], 1 }
 0x335   :  { %2240 = vsyncpa [#allocation7], 1 }
 0x336   :  { %2242 = vsyncpa [#allocation7 + $0x1], 1 }
 0x337   :  { %2243 = vsyncpa [#allocation5], 1 }
 0x338   :  { %2245 = vsyncpa [#allocation5 + $0x1], 1 }

</bundles_post_ra>
